<compile_context>
chip_gen: v6e
topology: v6e:2x2x1
jax: 0.10.0
libtpu: 0.0.40
codegen_flags: <defaults>
</compile_context>

<pallas_src>
import jax
import jax.numpy as jnp
from jax.experimental import pallas as pl
from jax.experimental.pallas import tpu as pltpu


def _make_qr_kernel(TB, C_in, C_tot, H, W):
    Wp = W + 2                      # padded row width
    L = (H - 1) * Wp + W            # flat span covering all valid output pixels

    def kernel(x_ref, w_ref, b_ref, o_ref):
        # x_ref : (TB, C_in, (H+2)*(W+2))  zero-padded input, spatial flattened
        # w_ref : (9, C_tot, C_in)         per-tap weights, tap index = kh*3+kw
        # b_ref : (C_tot, 1)               bias column
        # o_ref : (TB, C_tot, H*W)         channel-major output (lane-dense)
        bias = b_ref[...]                                  # hoisted broadcast source
        w_taps = [w_ref[t] for t in range(9)]              # hoisted 9 x (C_tot, C_in)

        for b in range(TB):                                # static unroll, TB small
            acc = None
            for t in range(9):
                kh, kw = divmod(t, 3)
                s = kh * Wp + kw                           # static per-tap shift
                rhs = x_ref[b, :, s:s + L]                 # (C_in, L) contiguous slice
                d = jnp.dot(w_taps[t], rhs,
                            preferred_element_type=jnp.float32)
                acc = d if acc is None else acc + d
            acc = acc + bias                               # (C_tot, L) f32
            # Compact padded-width rows -> dense H*W lane axis (VMEM-local).
            for h in range(H):
                o_ref[b, :, h * W:(h + 1) * W] = (
                    acc[:, h * Wp:h * Wp + W].astype(o_ref.dtype))

    return kernel


def _pick_batch_block(n, cap=8):
    """Largest divisor of n that is <= cap (keeps the static unroll small)."""
    tb = 1
    for d in range(1, min(n, cap) + 1):
        if n % d == 0:
            tb = d
    return tb


@jax.jit
def quantile_regression_forward(x_nchw, w_stacked, b_stacked):
    """Forward pass of QuantileRegressionLayer.

    x_nchw    : (N, C_mid, H, W)        float32
    w_stacked : (3*C_out, C_mid, 3, 3)  [lower; prediction; upper]
    b_stacked : (3*C_out,)
    returns   : (N, 3, C_out, H, W)     float32
    """
    N, C_in, H, W = x_nchw.shape
    C_tot = w_stacked.shape[0]
    C_out = C_tot // 3
    Hp, Wp = H + 2, W + 2
    Ppad = Hp * Wp
    P = H * W

    # Single zero-pad (the only activation prep that touches HBM) + metadata flatten.
    x_pad = jnp.pad(x_nchw, ((0, 0), (0, 0), (1, 1), (1, 1)))
    x_flat = x_pad.reshape(N, C_in, Ppad).astype(jnp.float32)

    # Weights as 9 per-tap (C_tot, C_in) matrices (tap index kh*3 + kw), bias column.
    w_taps = jnp.transpose(w_stacked, (2, 3, 0, 1)).reshape(9, C_tot, C_in)
    w_taps = w_taps.astype(jnp.float32)
    b_col = b_stacked.reshape(C_tot, 1).astype(jnp.float32)

    TB = _pick_batch_block(N)
    grid = (N // TB,)

    kernel = _make_qr_kernel(TB, C_in, C_tot, H, W)

    # VMEM per step is tiny here (~(TB*(C_in*Ppad + C_tot*P) + 9*C_tot*C_in)*4 B,
    # double-buffered).  For large H*W / C_in add a lane-tile axis over the
    # padded-flat spatial dim (multiples of 128) and set
    # pltpu.CompilerParams(vmem_limit_bytes=...) against v7x's 32 MiB scoped /
    # 64 MiB physical VMEM and v5e's 16 MiB scoped default.
    out = pl.pallas_call(
        kernel,
        out_shape=jax.ShapeDtypeStruct((N, C_tot, P), jnp.float32),
        grid_spec=pltpu.PrefetchScalarGridSpec(
            num_scalar_prefetch=0,
            grid=grid,
            in_specs=[
                pl.BlockSpec((TB, C_in, Ppad), lambda nb: (nb, 0, 0)),
                pl.BlockSpec((9, C_tot, C_in), lambda nb: (0, 0, 0)),   # DMA'd once
                pl.BlockSpec((C_tot, 1), lambda nb: (0, 0)),            # DMA'd once
            ],
            out_specs=pl.BlockSpec((TB, C_tot, P), lambda nb: (nb, 0, 0)),
        ),
        compiler_params=pltpu.CompilerParams(
            dimension_semantics=("parallel",)),
    )(x_flat, w_taps, b_col)

    # Channel-major output: this reshape is free metadata (no transpose pass).
    return out.reshape(N, 3, C_out, H, W)


def _reference_forward(x_nchw, w_stacked, b_stacked):
    """Pure-JAX reference using lax.conv (for correctness check)."""
    N, C_mid, H, W = x_nchw.shape
    C_tot = w_stacked.shape[0]
    C_out = C_tot // 3
    y = jax.lax.conv_general_dilated(
        x_nchw, w_stacked, window_strides=(1, 1), padding="SAME",
        dimension_numbers=("NCHW", "OIHW", "NCHW"))
    y = y + b_stacked.reshape(1, C_tot, 1, 1)
    return y.reshape(N, 3, C_out, H, W)


if __name__ == "__main__":
    # Small shapes consistent with the module's forward.
    N, C_mid, C_out, H, W = 2, 4, 4, 16, 16

    key = jax.random.PRNGKey(0)
    k_x, k_wl, k_wp, k_wu, k_b = jax.random.split(key, 5)

    x = jax.random.normal(k_x, (N, C_mid, H, W), dtype=jnp.float32)

    # Deterministic parameter init (shapes of nn.Conv2d(C_mid, C_out, 3, padding=1)).
    scale = 0.1
    w_lower = scale * jax.random.normal(k_wl, (C_out, C_mid, 3, 3), jnp.float32)
    w_pred = scale * jax.random.normal(k_wp, (C_out, C_mid, 3, 3), jnp.float32)
    w_upper = scale * jax.random.normal(k_wu, (C_out, C_mid, 3, 3), jnp.float32)
    b_all = scale * jax.random.normal(k_b, (3 * C_out,), jnp.float32)

    # Stack heads along the output-channel axis: [lower; prediction; upper].
    w_all = jnp.concatenate([w_lower, w_pred, w_upper], axis=0)

    out = quantile_regression_forward(x, w_all, b_all)
    out = jax.block_until_ready(out)

    ref = _reference_forward(x, w_all, b_all)
    assert out.shape == (N, 3, C_out, H, W)
    assert jnp.allclose(out, ref, atol=1e-4, rtol=1e-4)

    print("KERNEL_OK")
</pallas_src>

<mosaic_0001>
module attributes {stable_mosaic.version = 11 : i64} {
  func.func @kernel(%arg0: i32, %arg1: memref<2x4x324xf32, #tpu.memory_space<vmem>>, %arg2: memref<9x12x4xf32, #tpu.memory_space<vmem>>, %arg3: memref<12x1xf32, #tpu.memory_space<vmem>>, %arg4: memref<2x12x256xf32, #tpu.memory_space<vmem>>) attributes {dimension_semantics = [#tpu.dimension_semantics<parallel>], iteration_bounds = array<i64: 1>, scalar_prefetch = 0 : i64, scratch_operands = 0 : i64, tpu.core_type = #tpu.core_type<tc>, window_params = [{transform_indices = @transform_0, window_bounds = array<i64: 2, 4, 324>}, {pipeline_mode = #tpu.pipeline_mode<synchronous>, transform_indices = @transform_1, window_bounds = array<i64: 9, 12, 4>}, {pipeline_mode = #tpu.pipeline_mode<synchronous>, transform_indices = @transform_2, window_bounds = array<i64: 12, 1>}, {transform_indices = @transform_3, window_bounds = array<i64: 2, 12, 256>}]} {
    %c0 = arith.constant 0 : index
    %c0_0 = arith.constant 0 : index
    %0 = vector.load %arg3[%c0, %c0_0] : memref<12x1xf32, #tpu.memory_space<vmem>>, vector<12x1xf32>
    %c0_1 = arith.constant 0 : index
    %c0_2 = arith.constant 0 : index
    %c0_3 = arith.constant 0 : index
    %1 = vector.load %arg2[%c0_1, %c0_2, %c0_3] : memref<9x12x4xf32, #tpu.memory_space<vmem>>, vector<1x12x4xf32>
    %2 = vector.shape_cast %1 : vector<1x12x4xf32> to vector<12x4xf32>
    %c1 = arith.constant 1 : index
    %c0_4 = arith.constant 0 : index
    %c0_5 = arith.constant 0 : index
    %3 = vector.load %arg2[%c1, %c0_4, %c0_5] : memref<9x12x4xf32, #tpu.memory_space<vmem>>, vector<1x12x4xf32>
    %4 = vector.shape_cast %3 : vector<1x12x4xf32> to vector<12x4xf32>
    %c2 = arith.constant 2 : index
    %c0_6 = arith.constant 0 : index
    %c0_7 = arith.constant 0 : index
    %5 = vector.load %arg2[%c2, %c0_6, %c0_7] : memref<9x12x4xf32, #tpu.memory_space<vmem>>, vector<1x12x4xf32>
    %6 = vector.shape_cast %5 : vector<1x12x4xf32> to vector<12x4xf32>
    %c3 = arith.constant 3 : index
    %c0_8 = arith.constant 0 : index
    %c0_9 = arith.constant 0 : index
    %7 = vector.load %arg2[%c3, %c0_8, %c0_9] : memref<9x12x4xf32, #tpu.memory_space<vmem>>, vector<1x12x4xf32>
    %8 = vector.shape_cast %7 : vector<1x12x4xf32> to vector<12x4xf32>
    %c4 = arith.constant 4 : index
    %c0_10 = arith.constant 0 : index
    %c0_11 = arith.constant 0 : index
    %9 = vector.load %arg2[%c4, %c0_10, %c0_11] : memref<9x12x4xf32, #tpu.memory_space<vmem>>, vector<1x12x4xf32>
    %10 = vector.shape_cast %9 : vector<1x12x4xf32> to vector<12x4xf32>
    %c5 = arith.constant 5 : index
    %c0_12 = arith.constant 0 : index
    %c0_13 = arith.constant 0 : index
    %11 = vector.load %arg2[%c5, %c0_12, %c0_13] : memref<9x12x4xf32, #tpu.memory_space<vmem>>, vector<1x12x4xf32>
    %12 = vector.shape_cast %11 : vector<1x12x4xf32> to vector<12x4xf32>
    %c6 = arith.constant 6 : index
    %c0_14 = arith.constant 0 : index
    %c0_15 = arith.constant 0 : index
    %13 = vector.load %arg2[%c6, %c0_14, %c0_15] : memref<9x12x4xf32, #tpu.memory_space<vmem>>, vector<1x12x4xf32>
    %14 = vector.shape_cast %13 : vector<1x12x4xf32> to vector<12x4xf32>
    %c7 = arith.constant 7 : index
    %c0_16 = arith.constant 0 : index
    %c0_17 = arith.constant 0 : index
    %15 = vector.load %arg2[%c7, %c0_16, %c0_17] : memref<9x12x4xf32, #tpu.memory_space<vmem>>, vector<1x12x4xf32>
    %16 = vector.shape_cast %15 : vector<1x12x4xf32> to vector<12x4xf32>
    %c8 = arith.constant 8 : index
    %c0_18 = arith.constant 0 : index
    %c0_19 = arith.constant 0 : index
    %17 = vector.load %arg2[%c8, %c0_18, %c0_19] : memref<9x12x4xf32, #tpu.memory_space<vmem>>, vector<1x12x4xf32>
    %18 = vector.shape_cast %17 : vector<1x12x4xf32> to vector<12x4xf32>
    %c0_20 = arith.constant 0 : index
    %c0_21 = arith.constant 0 : index
    %c0_22 = arith.constant 0 : index
    %19 = vector.load %arg1[%c0_20, %c0_21, %c0_22] : memref<2x4x324xf32, #tpu.memory_space<vmem>>, vector<1x4x286xf32>
    %20 = vector.shape_cast %19 : vector<1x4x286xf32> to vector<4x286xf32>
    %cst = arith.constant dense<0.000000e+00> : vector<12x286xf32>
    %21 = tpu.matmul %2, %20, %cst {dimension_numbers = #tpu.dot_dimension_numbers<[1], [0], [0], [1], [0, 0, 1, 1], [], []>} : vector<12x4xf32>, vector<4x286xf32>, vector<12x286xf32> -> vector<12x286xf32>
    %c0_23 = arith.constant 0 : index
    %c0_24 = arith.constant 0 : index
    %c1_25 = arith.constant 1 : index
    %22 = vector.load %arg1[%c0_23, %c0_24, %c1_25] : memref<2x4x324xf32, #tpu.memory_space<vmem>>, vector<1x4x286xf32>
    %23 = vector.shape_cast %22 : vector<1x4x286xf32> to vector<4x286xf32>
    %cst_26 = arith.constant dense<0.000000e+00> : vector<12x286xf32>
    %24 = tpu.matmul %4, %23, %cst_26 {dimension_numbers = #tpu.dot_dimension_numbers<[1], [0], [0], [1], [0, 0, 1, 1], [], []>} : vector<12x4xf32>, vector<4x286xf32>, vector<12x286xf32> -> vector<12x286xf32>
    %25 = arith.addf %21, %24 : vector<12x286xf32>
    %c0_27 = arith.constant 0 : index
    %c0_28 = arith.constant 0 : index
    %c2_29 = arith.constant 2 : index
    %26 = vector.load %arg1[%c0_27, %c0_28, %c2_29] : memref<2x4x324xf32, #tpu.memory_space<vmem>>, vector<1x4x286xf32>
    %27 = vector.shape_cast %26 : vector<1x4x286xf32> to vector<4x286xf32>
    %cst_30 = arith.constant dense<0.000000e+00> : vector<12x286xf32>
    %28 = tpu.matmul %6, %27, %cst_30 {dimension_numbers = #tpu.dot_dimension_numbers<[1], [0], [0], [1], [0, 0, 1, 1], [], []>} : vector<12x4xf32>, vector<4x286xf32>, vector<12x286xf32> -> vector<12x286xf32>
    %29 = arith.addf %25, %28 : vector<12x286xf32>
    %c0_31 = arith.constant 0 : index
    %c0_32 = arith.constant 0 : index
    %c18 = arith.constant 18 : index
    %30 = vector.load %arg1[%c0_31, %c0_32, %c18] : memref<2x4x324xf32, #tpu.memory_space<vmem>>, vector<1x4x286xf32>
    %31 = vector.shape_cast %30 : vector<1x4x286xf32> to vector<4x286xf32>
    %cst_33 = arith.constant dense<0.000000e+00> : vector<12x286xf32>
    %32 = tpu.matmul %8, %31, %cst_33 {dimension_numbers = #tpu.dot_dimension_numbers<[1], [0], [0], [1], [0, 0, 1, 1], [], []>} : vector<12x4xf32>, vector<4x286xf32>, vector<12x286xf32> -> vector<12x286xf32>
    %33 = arith.addf %29, %32 : vector<12x286xf32>
    %c0_34 = arith.constant 0 : index
    %c0_35 = arith.constant 0 : index
    %c19 = arith.constant 19 : index
    %34 = vector.load %arg1[%c0_34, %c0_35, %c19] : memref<2x4x324xf32, #tpu.memory_space<vmem>>, vector<1x4x286xf32>
    %35 = vector.shape_cast %34 : vector<1x4x286xf32> to vector<4x286xf32>
    %cst_36 = arith.constant dense<0.000000e+00> : vector<12x286xf32>
    %36 = tpu.matmul %10, %35, %cst_36 {dimension_numbers = #tpu.dot_dimension_numbers<[1], [0], [0], [1], [0, 0, 1, 1], [], []>} : vector<12x4xf32>, vector<4x286xf32>, vector<12x286xf32> -> vector<12x286xf32>
    %37 = arith.addf %33, %36 : vector<12x286xf32>
    %c0_37 = arith.constant 0 : index
    %c0_38 = arith.constant 0 : index
    %c20 = arith.constant 20 : index
    %38 = vector.load %arg1[%c0_37, %c0_38, %c20] : memref<2x4x324xf32, #tpu.memory_space<vmem>>, vector<1x4x286xf32>
    %39 = vector.shape_cast %38 : vector<1x4x286xf32> to vector<4x286xf32>
    %cst_39 = arith.constant dense<0.000000e+00> : vector<12x286xf32>
    %40 = tpu.matmul %12, %39, %cst_39 {dimension_numbers = #tpu.dot_dimension_numbers<[1], [0], [0], [1], [0, 0, 1, 1], [], []>} : vector<12x4xf32>, vector<4x286xf32>, vector<12x286xf32> -> vector<12x286xf32>
    %41 = arith.addf %37, %40 : vector<12x286xf32>
    %c0_40 = arith.constant 0 : index
    %c0_41 = arith.constant 0 : index
    %c36 = arith.constant 36 : index
    %42 = vector.load %arg1[%c0_40, %c0_41, %c36] : memref<2x4x324xf32, #tpu.memory_space<vmem>>, vector<1x4x286xf32>
    %43 = vector.shape_cast %42 : vector<1x4x286xf32> to vector<4x286xf32>
    %cst_42 = arith.constant dense<0.000000e+00> : vector<12x286xf32>
    %44 = tpu.matmul %14, %43, %cst_42 {dimension_numbers = #tpu.dot_dimension_numbers<[1], [0], [0], [1], [0, 0, 1, 1], [], []>} : vector<12x4xf32>, vector<4x286xf32>, vector<12x286xf32> -> vector<12x286xf32>
    %45 = arith.addf %41, %44 : vector<12x286xf32>
    %c0_43 = arith.constant 0 : index
    %c0_44 = arith.constant 0 : index
    %c37 = arith.constant 37 : index
    %46 = vector.load %arg1[%c0_43, %c0_44, %c37] : memref<2x4x324xf32, #tpu.memory_space<vmem>>, vector<1x4x286xf32>
    %47 = vector.shape_cast %46 : vector<1x4x286xf32> to vector<4x286xf32>
    %cst_45 = arith.constant dense<0.000000e+00> : vector<12x286xf32>
    %48 = tpu.matmul %16, %47, %cst_45 {dimension_numbers = #tpu.dot_dimension_numbers<[1], [0], [0], [1], [0, 0, 1, 1], [], []>} : vector<12x4xf32>, vector<4x286xf32>, vector<12x286xf32> -> vector<12x286xf32>
    %49 = arith.addf %45, %48 : vector<12x286xf32>
    %c0_46 = arith.constant 0 : index
    %c0_47 = arith.constant 0 : index
    %c38 = arith.constant 38 : index
    %50 = vector.load %arg1[%c0_46, %c0_47, %c38] : memref<2x4x324xf32, #tpu.memory_space<vmem>>, vector<1x4x286xf32>
    %51 = vector.shape_cast %50 : vector<1x4x286xf32> to vector<4x286xf32>
    %cst_48 = arith.constant dense<0.000000e+00> : vector<12x286xf32>
    %52 = tpu.matmul %18, %51, %cst_48 {dimension_numbers = #tpu.dot_dimension_numbers<[1], [0], [0], [1], [0, 0, 1, 1], [], []>} : vector<12x4xf32>, vector<4x286xf32>, vector<12x286xf32> -> vector<12x286xf32>
    %53 = arith.addf %49, %52 : vector<12x286xf32>
    %54 = vector.broadcast %0 : vector<12x1xf32> to vector<12x286xf32>
    %55 = arith.addf %53, %54 : vector<12x286xf32>
    %56 = vector.extract_strided_slice %55 {offsets = [0, 0], sizes = [12, 16], strides = [1, 1]} : vector<12x286xf32> to vector<12x16xf32>
    %c0_49 = arith.constant 0 : index
    %c0_50 = arith.constant 0 : index
    %c0_51 = arith.constant 0 : index
    %57 = vector.load %arg4[%c0_49, %c0_50, %c0_51] : memref<2x12x256xf32, #tpu.memory_space<vmem>>, vector<1x12x16xf32>
    %58 = vector.shape_cast %57 : vector<1x12x16xf32> to vector<12x16xf32>
    %59 = vector.shape_cast %56 : vector<12x16xf32> to vector<1x12x16xf32>
    tpu.vector_store %arg4[%c0_49, %c0_50, %c0_51], %59 {strides = array<i32>} : memref<2x12x256xf32, #tpu.memory_space<vmem>>, vector<1x12x16xf32>,
    %60 = vector.extract_strided_slice %55 {offsets = [0, 18], sizes = [12, 16], strides = [1, 1]} : vector<12x286xf32> to vector<12x16xf32>
    %c0_52 = arith.constant 0 : index
    %c0_53 = arith.constant 0 : index
    %c16 = arith.constant 16 : index
    %61 = vector.load %arg4[%c0_52, %c0_53, %c16] : memref<2x12x256xf32, #tpu.memory_space<vmem>>, vector<1x12x16xf32>
    %62 = vector.shape_cast %61 : vector<1x12x16xf32> to vector<12x16xf32>
    %63 = vector.shape_cast %60 : vector<12x16xf32> to vector<1x12x16xf32>
    tpu.vector_store %arg4[%c0_52, %c0_53, %c16], %63 {strides = array<i32>} : memref<2x12x256xf32, #tpu.memory_space<vmem>>, vector<1x12x16xf32>,
    %64 = vector.extract_strided_slice %55 {offsets = [0, 36], sizes = [12, 16], strides = [1, 1]} : vector<12x286xf32> to vector<12x16xf32>
    %c0_54 = arith.constant 0 : index
    %c0_55 = arith.constant 0 : index
    %c32 = arith.constant 32 : index
    %65 = vector.load %arg4[%c0_54, %c0_55, %c32] : memref<2x12x256xf32, #tpu.memory_space<vmem>>, vector<1x12x16xf32>
    %66 = vector.shape_cast %65 : vector<1x12x16xf32> to vector<12x16xf32>
    %67 = vector.shape_cast %64 : vector<12x16xf32> to vector<1x12x16xf32>
    tpu.vector_store %arg4[%c0_54, %c0_55, %c32], %67 {strides = array<i32>} : memref<2x12x256xf32, #tpu.memory_space<vmem>>, vector<1x12x16xf32>,
    %68 = vector.extract_strided_slice %55 {offsets = [0, 54], sizes = [12, 16], strides = [1, 1]} : vector<12x286xf32> to vector<12x16xf32>
    %c0_56 = arith.constant 0 : index
    %c0_57 = arith.constant 0 : index
    %c48 = arith.constant 48 : index
    %69 = vector.load %arg4[%c0_56, %c0_57, %c48] : memref<2x12x256xf32, #tpu.memory_space<vmem>>, vector<1x12x16xf32>
    %70 = vector.shape_cast %69 : vector<1x12x16xf32> to vector<12x16xf32>
    %71 = vector.shape_cast %68 : vector<12x16xf32> to vector<1x12x16xf32>
    tpu.vector_store %arg4[%c0_56, %c0_57, %c48], %71 {strides = array<i32>} : memref<2x12x256xf32, #tpu.memory_space<vmem>>, vector<1x12x16xf32>,
    %72 = vector.extract_strided_slice %55 {offsets = [0, 72], sizes = [12, 16], strides = [1, 1]} : vector<12x286xf32> to vector<12x16xf32>
    %c0_58 = arith.constant 0 : index
    %c0_59 = arith.constant 0 : index
    %c64 = arith.constant 64 : index
    %73 = vector.load %arg4[%c0_58, %c0_59, %c64] : memref<2x12x256xf32, #tpu.memory_space<vmem>>, vector<1x12x16xf32>
    %74 = vector.shape_cast %73 : vector<1x12x16xf32> to vector<12x16xf32>
    %75 = vector.shape_cast %72 : vector<12x16xf32> to vector<1x12x16xf32>
    tpu.vector_store %arg4[%c0_58, %c0_59, %c64], %75 {strides = array<i32>} : memref<2x12x256xf32, #tpu.memory_space<vmem>>, vector<1x12x16xf32>,
    %76 = vector.extract_strided_slice %55 {offsets = [0, 90], sizes = [12, 16], strides = [1, 1]} : vector<12x286xf32> to vector<12x16xf32>
    %c0_60 = arith.constant 0 : index
    %c0_61 = arith.constant 0 : index
    %c80 = arith.constant 80 : index
    %77 = vector.load %arg4[%c0_60, %c0_61, %c80] : memref<2x12x256xf32, #tpu.memory_space<vmem>>, vector<1x12x16xf32>
    %78 = vector.shape_cast %77 : vector<1x12x16xf32> to vector<12x16xf32>
    %79 = vector.shape_cast %76 : vector<12x16xf32> to vector<1x12x16xf32>
    tpu.vector_store %arg4[%c0_60, %c0_61, %c80], %79 {strides = array<i32>} : memref<2x12x256xf32, #tpu.memory_space<vmem>>, vector<1x12x16xf32>,
    %80 = vector.extract_strided_slice %55 {offsets = [0, 108], sizes = [12, 16], strides = [1, 1]} : vector<12x286xf32> to vector<12x16xf32>
    %c0_62 = arith.constant 0 : index
    %c0_63 = arith.constant 0 : index
    %c96 = arith.constant 96 : index
    %81 = vector.load %arg4[%c0_62, %c0_63, %c96] : memref<2x12x256xf32, #tpu.memory_space<vmem>>, vector<1x12x16xf32>
    %82 = vector.shape_cast %81 : vector<1x12x16xf32> to vector<12x16xf32>
    %83 = vector.shape_cast %80 : vector<12x16xf32> to vector<1x12x16xf32>
    tpu.vector_store %arg4[%c0_62, %c0_63, %c96], %83 {strides = array<i32>} : memref<2x12x256xf32, #tpu.memory_space<vmem>>, vector<1x12x16xf32>,
    %84 = vector.extract_strided_slice %55 {offsets = [0, 126], sizes = [12, 16], strides = [1, 1]} : vector<12x286xf32> to vector<12x16xf32>
    %c0_64 = arith.constant 0 : index
    %c0_65 = arith.constant 0 : index
    %c112 = arith.constant 112 : index
    %85 = vector.load %arg4[%c0_64, %c0_65, %c112] : memref<2x12x256xf32, #tpu.memory_space<vmem>>, vector<1x12x16xf32>
    %86 = vector.shape_cast %85 : vector<1x12x16xf32> to vector<12x16xf32>
    %87 = vector.shape_cast %84 : vector<12x16xf32> to vector<1x12x16xf32>
    tpu.vector_store %arg4[%c0_64, %c0_65, %c112], %87 {strides = array<i32>} : memref<2x12x256xf32, #tpu.memory_space<vmem>>, vector<1x12x16xf32>,
    %88 = vector.extract_strided_slice %55 {offsets = [0, 144], sizes = [12, 16], strides = [1, 1]} : vector<12x286xf32> to vector<12x16xf32>
    %c0_66 = arith.constant 0 : index
    %c0_67 = arith.constant 0 : index
    %c128 = arith.constant 128 : index
    %89 = vector.load %arg4[%c0_66, %c0_67, %c128] : memref<2x12x256xf32, #tpu.memory_space<vmem>>, vector<1x12x16xf32>
    %90 = vector.shape_cast %89 : vector<1x12x16xf32> to vector<12x16xf32>
    %91 = vector.shape_cast %88 : vector<12x16xf32> to vector<1x12x16xf32>
    tpu.vector_store %arg4[%c0_66, %c0_67, %c128], %91 {strides = array<i32>} : memref<2x12x256xf32, #tpu.memory_space<vmem>>, vector<1x12x16xf32>,
    %92 = vector.extract_strided_slice %55 {offsets = [0, 162], sizes = [12, 16], strides = [1, 1]} : vector<12x286xf32> to vector<12x16xf32>
    %c0_68 = arith.constant 0 : index
    %c0_69 = arith.constant 0 : index
    %c144 = arith.constant 144 : index
    %93 = vector.load %arg4[%c0_68, %c0_69, %c144] : memref<2x12x256xf32, #tpu.memory_space<vmem>>, vector<1x12x16xf32>
    %94 = vector.shape_cast %93 : vector<1x12x16xf32> to vector<12x16xf32>
    %95 = vector.shape_cast %92 : vector<12x16xf32> to vector<1x12x16xf32>
    tpu.vector_store %arg4[%c0_68, %c0_69, %c144], %95 {strides = array<i32>} : memref<2x12x256xf32, #tpu.memory_space<vmem>>, vector<1x12x16xf32>,
    %96 = vector.extract_strided_slice %55 {offsets = [0, 180], sizes = [12, 16], strides = [1, 1]} : vector<12x286xf32> to vector<12x16xf32>
    %c0_70 = arith.constant 0 : index
    %c0_71 = arith.constant 0 : index
    %c160 = arith.constant 160 : index
    %97 = vector.load %arg4[%c0_70, %c0_71, %c160] : memref<2x12x256xf32, #tpu.memory_space<vmem>>, vector<1x12x16xf32>
    %98 = vector.shape_cast %97 : vector<1x12x16xf32> to vector<12x16xf32>
    %99 = vector.shape_cast %96 : vector<12x16xf32> to vector<1x12x16xf32>
    tpu.vector_store %arg4[%c0_70, %c0_71, %c160], %99 {strides = array<i32>} : memref<2x12x256xf32, #tpu.memory_space<vmem>>, vector<1x12x16xf32>,
    %100 = vector.extract_strided_slice %55 {offsets = [0, 198], sizes = [12, 16], strides = [1, 1]} : vector<12x286xf32> to vector<12x16xf32>
    %c0_72 = arith.constant 0 : index
    %c0_73 = arith.constant 0 : index
    %c176 = arith.constant 176 : index
    %101 = vector.load %arg4[%c0_72, %c0_73, %c176] : memref<2x12x256xf32, #tpu.memory_space<vmem>>, vector<1x12x16xf32>
    %102 = vector.shape_cast %101 : vector<1x12x16xf32> to vector<12x16xf32>
    %103 = vector.shape_cast %100 : vector<12x16xf32> to vector<1x12x16xf32>
    tpu.vector_store %arg4[%c0_72, %c0_73, %c176], %103 {strides = array<i32>} : memref<2x12x256xf32, #tpu.memory_space<vmem>>, vector<1x12x16xf32>,
    %104 = vector.extract_strided_slice %55 {offsets = [0, 216], sizes = [12, 16], strides = [1, 1]} : vector<12x286xf32> to vector<12x16xf32>
    %c0_74 = arith.constant 0 : index
    %c0_75 = arith.constant 0 : index
    %c192 = arith.constant 192 : index
    %105 = vector.load %arg4[%c0_74, %c0_75, %c192] : memref<2x12x256xf32, #tpu.memory_space<vmem>>, vector<1x12x16xf32>
    %106 = vector.shape_cast %105 : vector<1x12x16xf32> to vector<12x16xf32>
    %107 = vector.shape_cast %104 : vector<12x16xf32> to vector<1x12x16xf32>
    tpu.vector_store %arg4[%c0_74, %c0_75, %c192], %107 {strides = array<i32>} : memref<2x12x256xf32, #tpu.memory_space<vmem>>, vector<1x12x16xf32>,
    %108 = vector.extract_strided_slice %55 {offsets = [0, 234], sizes = [12, 16], strides = [1, 1]} : vector<12x286xf32> to vector<12x16xf32>
    %c0_76 = arith.constant 0 : index
    %c0_77 = arith.constant 0 : index
    %c208 = arith.constant 208 : index
    %109 = vector.load %arg4[%c0_76, %c0_77, %c208] : memref<2x12x256xf32, #tpu.memory_space<vmem>>, vector<1x12x16xf32>
    %110 = vector.shape_cast %109 : vector<1x12x16xf32> to vector<12x16xf32>
    %111 = vector.shape_cast %108 : vector<12x16xf32> to vector<1x12x16xf32>
    tpu.vector_store %arg4[%c0_76, %c0_77, %c208], %111 {strides = array<i32>} : memref<2x12x256xf32, #tpu.memory_space<vmem>>, vector<1x12x16xf32>,
    %112 = vector.extract_strided_slice %55 {offsets = [0, 252], sizes = [12, 16], strides = [1, 1]} : vector<12x286xf32> to vector<12x16xf32>
    %c0_78 = arith.constant 0 : index
    %c0_79 = arith.constant 0 : index
    %c224 = arith.constant 224 : index
    %113 = vector.load %arg4[%c0_78, %c0_79, %c224] : memref<2x12x256xf32, #tpu.memory_space<vmem>>, vector<1x12x16xf32>
    %114 = vector.shape_cast %113 : vector<1x12x16xf32> to vector<12x16xf32>
    %115 = vector.shape_cast %112 : vector<12x16xf32> to vector<1x12x16xf32>
    tpu.vector_store %arg4[%c0_78, %c0_79, %c224], %115 {strides = array<i32>} : memref<2x12x256xf32, #tpu.memory_space<vmem>>, vector<1x12x16xf32>,
    %116 = vector.extract_strided_slice %55 {offsets = [0, 270], sizes = [12, 16], strides = [1, 1]} : vector<12x286xf32> to vector<12x16xf32>
    %c0_80 = arith.constant 0 : index
    %c0_81 = arith.constant 0 : index
    %c240 = arith.constant 240 : index
    %117 = vector.load %arg4[%c0_80, %c0_81, %c240] : memref<2x12x256xf32, #tpu.memory_space<vmem>>, vector<1x12x16xf32>
    %118 = vector.shape_cast %117 : vector<1x12x16xf32> to vector<12x16xf32>
    %119 = vector.shape_cast %116 : vector<12x16xf32> to vector<1x12x16xf32>
    tpu.vector_store %arg4[%c0_80, %c0_81, %c240], %119 {strides = array<i32>} : memref<2x12x256xf32, #tpu.memory_space<vmem>>, vector<1x12x16xf32>,
    %c1_82 = arith.constant 1 : index
    %c0_83 = arith.constant 0 : index
    %c0_84 = arith.constant 0 : index
    %120 = vector.load %arg1[%c1_82, %c0_83, %c0_84] : memref<2x4x324xf32, #tpu.memory_space<vmem>>, vector<1x4x286xf32>
    %121 = vector.shape_cast %120 : vector<1x4x286xf32> to vector<4x286xf32>
    %cst_85 = arith.constant dense<0.000000e+00> : vector<12x286xf32>
    %122 = tpu.matmul %2, %121, %cst_85 {dimension_numbers = #tpu.dot_dimension_numbers<[1], [0], [0], [1], [0, 0, 1, 1], [], []>} : vector<12x4xf32>, vector<4x286xf32>, vector<12x286xf32> -> vector<12x286xf32>
    %c1_86 = arith.constant 1 : index
    %c0_87 = arith.constant 0 : index
    %c1_88 = arith.constant 1 : index
    %123 = vector.load %arg1[%c1_86, %c0_87, %c1_88] : memref<2x4x324xf32, #tpu.memory_space<vmem>>, vector<1x4x286xf32>
    %124 = vector.shape_cast %123 : vector<1x4x286xf32> to vector<4x286xf32>
    %cst_89 = arith.constant dense<0.000000e+00> : vector<12x286xf32>
    %125 = tpu.matmul %4, %124, %cst_89 {dimension_numbers = #tpu.dot_dimension_numbers<[1], [0], [0], [1], [0, 0, 1, 1], [], []>} : vector<12x4xf32>, vector<4x286xf32>, vector<12x286xf32> -> vector<12x286xf32>
    %126 = arith.addf %122, %125 : vector<12x286xf32>
    %c1_90 = arith.constant 1 : index
    %c0_91 = arith.constant 0 : index
    %c2_92 = arith.constant 2 : index
    %127 = vector.load %arg1[%c1_90, %c0_91, %c2_92] : memref<2x4x324xf32, #tpu.memory_space<vmem>>, vector<1x4x286xf32>
    %128 = vector.shape_cast %127 : vector<1x4x286xf32> to vector<4x286xf32>
    %cst_93 = arith.constant dense<0.000000e+00> : vector<12x286xf32>
    %129 = tpu.matmul %6, %128, %cst_93 {dimension_numbers = #tpu.dot_dimension_numbers<[1], [0], [0], [1], [0, 0, 1, 1], [], []>} : vector<12x4xf32>, vector<4x286xf32>, vector<12x286xf32> -> vector<12x286xf32>
    %130 = arith.addf %126, %129 : vector<12x286xf32>
    %c1_94 = arith.constant 1 : index
    %c0_95 = arith.constant 0 : index
    %c18_96 = arith.constant 18 : index
    %131 = vector.load %arg1[%c1_94, %c0_95, %c18_96] : memref<2x4x324xf32, #tpu.memory_space<vmem>>, vector<1x4x286xf32>
    %132 = vector.shape_cast %131 : vector<1x4x286xf32> to vector<4x286xf32>
    %cst_97 = arith.constant dense<0.000000e+00> : vector<12x286xf32>
    %133 = tpu.matmul %8, %132, %cst_97 {dimension_numbers = #tpu.dot_dimension_numbers<[1], [0], [0], [1], [0, 0, 1, 1], [], []>} : vector<12x4xf32>, vector<4x286xf32>, vector<12x286xf32> -> vector<12x286xf32>
    %134 = arith.addf %130, %133 : vector<12x286xf32>
    %c1_98 = arith.constant 1 : index
    %c0_99 = arith.constant 0 : index
    %c19_100 = arith.constant 19 : index
    %135 = vector.load %arg1[%c1_98, %c0_99, %c19_100] : memref<2x4x324xf32, #tpu.memory_space<vmem>>, vector<1x4x286xf32>
    %136 = vector.shape_cast %135 : vector<1x4x286xf32> to vector<4x286xf32>
    %cst_101 = arith.constant dense<0.000000e+00> : vector<12x286xf32>
    %137 = tpu.matmul %10, %136, %cst_101 {dimension_numbers = #tpu.dot_dimension_numbers<[1], [0], [0], [1], [0, 0, 1, 1], [], []>} : vector<12x4xf32>, vector<4x286xf32>, vector<12x286xf32> -> vector<12x286xf32>
    %138 = arith.addf %134, %137 : vector<12x286xf32>
    %c1_102 = arith.constant 1 : index
    %c0_103 = arith.constant 0 : index
    %c20_104 = arith.constant 20 : index
    %139 = vector.load %arg1[%c1_102, %c0_103, %c20_104] : memref<2x4x324xf32, #tpu.memory_space<vmem>>, vector<1x4x286xf32>
    %140 = vector.shape_cast %139 : vector<1x4x286xf32> to vector<4x286xf32>
    %cst_105 = arith.constant dense<0.000000e+00> : vector<12x286xf32>
    %141 = tpu.matmul %12, %140, %cst_105 {dimension_numbers = #tpu.dot_dimension_numbers<[1], [0], [0], [1], [0, 0, 1, 1], [], []>} : vector<12x4xf32>, vector<4x286xf32>, vector<12x286xf32> -> vector<12x286xf32>
    %142 = arith.addf %138, %141 : vector<12x286xf32>
    %c1_106 = arith.constant 1 : index
    %c0_107 = arith.constant 0 : index
    %c36_108 = arith.constant 36 : index
    %143 = vector.load %arg1[%c1_106, %c0_107, %c36_108] : memref<2x4x324xf32, #tpu.memory_space<vmem>>, vector<1x4x286xf32>
    %144 = vector.shape_cast %143 : vector<1x4x286xf32> to vector<4x286xf32>
    %cst_109 = arith.constant dense<0.000000e+00> : vector<12x286xf32>
    %145 = tpu.matmul %14, %144, %cst_109 {dimension_numbers = #tpu.dot_dimension_numbers<[1], [0], [0], [1], [0, 0, 1, 1], [], []>} : vector<12x4xf32>, vector<4x286xf32>, vector<12x286xf32> -> vector<12x286xf32>
    %146 = arith.addf %142, %145 : vector<12x286xf32>
    %c1_110 = arith.constant 1 : index
    %c0_111 = arith.constant 0 : index
    %c37_112 = arith.constant 37 : index
    %147 = vector.load %arg1[%c1_110, %c0_111, %c37_112] : memref<2x4x324xf32, #tpu.memory_space<vmem>>, vector<1x4x286xf32>
    %148 = vector.shape_cast %147 : vector<1x4x286xf32> to vector<4x286xf32>
    %cst_113 = arith.constant dense<0.000000e+00> : vector<12x286xf32>
    %149 = tpu.matmul %16, %148, %cst_113 {dimension_numbers = #tpu.dot_dimension_numbers<[1], [0], [0], [1], [0, 0, 1, 1], [], []>} : vector<12x4xf32>, vector<4x286xf32>, vector<12x286xf32> -> vector<12x286xf32>
    %150 = arith.addf %146, %149 : vector<12x286xf32>
    %c1_114 = arith.constant 1 : index
    %c0_115 = arith.constant 0 : index
    %c38_116 = arith.constant 38 : index
    %151 = vector.load %arg1[%c1_114, %c0_115, %c38_116] : memref<2x4x324xf32, #tpu.memory_space<vmem>>, vector<1x4x286xf32>
    %152 = vector.shape_cast %151 : vector<1x4x286xf32> to vector<4x286xf32>
    %cst_117 = arith.constant dense<0.000000e+00> : vector<12x286xf32>
    %153 = tpu.matmul %18, %152, %cst_117 {dimension_numbers = #tpu.dot_dimension_numbers<[1], [0], [0], [1], [0, 0, 1, 1], [], []>} : vector<12x4xf32>, vector<4x286xf32>, vector<12x286xf32> -> vector<12x286xf32>
    %154 = arith.addf %150, %153 : vector<12x286xf32>
    %155 = vector.broadcast %0 : vector<12x1xf32> to vector<12x286xf32>
    %156 = arith.addf %154, %155 : vector<12x286xf32>
    %157 = vector.extract_strided_slice %156 {offsets = [0, 0], sizes = [12, 16], strides = [1, 1]} : vector<12x286xf32> to vector<12x16xf32>
    %c1_118 = arith.constant 1 : index
    %c0_119 = arith.constant 0 : index
    %c0_120 = arith.constant 0 : index
    %158 = vector.load %arg4[%c1_118, %c0_119, %c0_120] : memref<2x12x256xf32, #tpu.memory_space<vmem>>, vector<1x12x16xf32>
    %159 = vector.shape_cast %158 : vector<1x12x16xf32> to vector<12x16xf32>
    %160 = vector.shape_cast %157 : vector<12x16xf32> to vector<1x12x16xf32>
    tpu.vector_store %arg4[%c1_118, %c0_119, %c0_120], %160 {strides = array<i32>} : memref<2x12x256xf32, #tpu.memory_space<vmem>>, vector<1x12x16xf32>,
    %161 = vector.extract_strided_slice %156 {offsets = [0, 18], sizes = [12, 16], strides = [1, 1]} : vector<12x286xf32> to vector<12x16xf32>
    %c1_121 = arith.constant 1 : index
    %c0_122 = arith.constant 0 : index
    %c16_123 = arith.constant 16 : index
    %162 = vector.load %arg4[%c1_121, %c0_122, %c16_123] : memref<2x12x256xf32, #tpu.memory_space<vmem>>, vector<1x12x16xf32>
    %163 = vector.shape_cast %162 : vector<1x12x16xf32> to vector<12x16xf32>
    %164 = vector.shape_cast %161 : vector<12x16xf32> to vector<1x12x16xf32>
    tpu.vector_store %arg4[%c1_121, %c0_122, %c16_123], %164 {strides = array<i32>} : memref<2x12x256xf32, #tpu.memory_space<vmem>>, vector<1x12x16xf32>,
    %165 = vector.extract_strided_slice %156 {offsets = [0, 36], sizes = [12, 16], strides = [1, 1]} : vector<12x286xf32> to vector<12x16xf32>
    %c1_124 = arith.constant 1 : index
    %c0_125 = arith.constant 0 : index
    %c32_126 = arith.constant 32 : index
    %166 = vector.load %arg4[%c1_124, %c0_125, %c32_126] : memref<2x12x256xf32, #tpu.memory_space<vmem>>, vector<1x12x16xf32>
    %167 = vector.shape_cast %166 : vector<1x12x16xf32> to vector<12x16xf32>
    %168 = vector.shape_cast %165 : vector<12x16xf32> to vector<1x12x16xf32>
    tpu.vector_store %arg4[%c1_124, %c0_125, %c32_126], %168 {strides = array<i32>} : memref<2x12x256xf32, #tpu.memory_space<vmem>>, vector<1x12x16xf32>,
    %169 = vector.extract_strided_slice %156 {offsets = [0, 54], sizes = [12, 16], strides = [1, 1]} : vector<12x286xf32> to vector<12x16xf32>
    %c1_127 = arith.constant 1 : index
    %c0_128 = arith.constant 0 : index
    %c48_129 = arith.constant 48 : index
    %170 = vector.load %arg4[%c1_127, %c0_128, %c48_129] : memref<2x12x256xf32, #tpu.memory_space<vmem>>, vector<1x12x16xf32>
    %171 = vector.shape_cast %170 : vector<1x12x16xf32> to vector<12x16xf32>
    %172 = vector.shape_cast %169 : vector<12x16xf32> to vector<1x12x16xf32>
    tpu.vector_store %arg4[%c1_127, %c0_128, %c48_129], %172 {strides = array<i32>} : memref<2x12x256xf32, #tpu.memory_space<vmem>>, vector<1x12x16xf32>,
    %173 = vector.extract_strided_slice %156 {offsets = [0, 72], sizes = [12, 16], strides = [1, 1]} : vector<12x286xf32> to vector<12x16xf32>
    %c1_130 = arith.constant 1 : index
    %c0_131 = arith.constant 0 : index
    %c64_132 = arith.constant 64 : index
    %174 = vector.load %arg4[%c1_130, %c0_131, %c64_132] : memref<2x12x256xf32, #tpu.memory_space<vmem>>, vector<1x12x16xf32>
    %175 = vector.shape_cast %174 : vector<1x12x16xf32> to vector<12x16xf32>
    %176 = vector.shape_cast %173 : vector<12x16xf32> to vector<1x12x16xf32>
    tpu.vector_store %arg4[%c1_130, %c0_131, %c64_132], %176 {strides = array<i32>} : memref<2x12x256xf32, #tpu.memory_space<vmem>>, vector<1x12x16xf32>,
    %177 = vector.extract_strided_slice %156 {offsets = [0, 90], sizes = [12, 16], strides = [1, 1]} : vector<12x286xf32> to vector<12x16xf32>
    %c1_133 = arith.constant 1 : index
    %c0_134 = arith.constant 0 : index
    %c80_135 = arith.constant 80 : index
    %178 = vector.load %arg4[%c1_133, %c0_134, %c80_135] : memref<2x12x256xf32, #tpu.memory_space<vmem>>, vector<1x12x16xf32>
    %179 = vector.shape_cast %178 : vector<1x12x16xf32> to vector<12x16xf32>
    %180 = vector.shape_cast %177 : vector<12x16xf32> to vector<1x12x16xf32>
    tpu.vector_store %arg4[%c1_133, %c0_134, %c80_135], %180 {strides = array<i32>} : memref<2x12x256xf32, #tpu.memory_space<vmem>>, vector<1x12x16xf32>,
    %181 = vector.extract_strided_slice %156 {offsets = [0, 108], sizes = [12, 16], strides = [1, 1]} : vector<12x286xf32> to vector<12x16xf32>
    %c1_136 = arith.constant 1 : index
    %c0_137 = arith.constant 0 : index
    %c96_138 = arith.constant 96 : index
    %182 = vector.load %arg4[%c1_136, %c0_137, %c96_138] : memref<2x12x256xf32, #tpu.memory_space<vmem>>, vector<1x12x16xf32>
    %183 = vector.shape_cast %182 : vector<1x12x16xf32> to vector<12x16xf32>
    %184 = vector.shape_cast %181 : vector<12x16xf32> to vector<1x12x16xf32>
    tpu.vector_store %arg4[%c1_136, %c0_137, %c96_138], %184 {strides = array<i32>} : memref<2x12x256xf32, #tpu.memory_space<vmem>>, vector<1x12x16xf32>,
    %185 = vector.extract_strided_slice %156 {offsets = [0, 126], sizes = [12, 16], strides = [1, 1]} : vector<12x286xf32> to vector<12x16xf32>
    %c1_139 = arith.constant 1 : index
    %c0_140 = arith.constant 0 : index
    %c112_141 = arith.constant 112 : index
    %186 = vector.load %arg4[%c1_139, %c0_140, %c112_141] : memref<2x12x256xf32, #tpu.memory_space<vmem>>, vector<1x12x16xf32>
    %187 = vector.shape_cast %186 : vector<1x12x16xf32> to vector<12x16xf32>
    %188 = vector.shape_cast %185 : vector<12x16xf32> to vector<1x12x16xf32>
    tpu.vector_store %arg4[%c1_139, %c0_140, %c112_141], %188 {strides = array<i32>} : memref<2x12x256xf32, #tpu.memory_space<vmem>>, vector<1x12x16xf32>,
    %189 = vector.extract_strided_slice %156 {offsets = [0, 144], sizes = [12, 16], strides = [1, 1]} : vector<12x286xf32> to vector<12x16xf32>
    %c1_142 = arith.constant 1 : index
    %c0_143 = arith.constant 0 : index
    %c128_144 = arith.constant 128 : index
    %190 = vector.load %arg4[%c1_142, %c0_143, %c128_144] : memref<2x12x256xf32, #tpu.memory_space<vmem>>, vector<1x12x16xf32>
    %191 = vector.shape_cast %190 : vector<1x12x16xf32> to vector<12x16xf32>
    %192 = vector.shape_cast %189 : vector<12x16xf32> to vector<1x12x16xf32>
    tpu.vector_store %arg4[%c1_142, %c0_143, %c128_144], %192 {strides = array<i32>} : memref<2x12x256xf32, #tpu.memory_space<vmem>>, vector<1x12x16xf32>,
    %193 = vector.extract_strided_slice %156 {offsets = [0, 162], sizes = [12, 16], strides = [1, 1]} : vector<12x286xf32> to vector<12x16xf32>
    %c1_145 = arith.constant 1 : index
    %c0_146 = arith.constant 0 : index
    %c144_147 = arith.constant 144 : index
    %194 = vector.load %arg4[%c1_145, %c0_146, %c144_147] : memref<2x12x256xf32, #tpu.memory_space<vmem>>, vector<1x12x16xf32>
    %195 = vector.shape_cast %194 : vector<1x12x16xf32> to vector<12x16xf32>
    %196 = vector.shape_cast %193 : vector<12x16xf32> to vector<1x12x16xf32>
    tpu.vector_store %arg4[%c1_145, %c0_146, %c144_147], %196 {strides = array<i32>} : memref<2x12x256xf32, #tpu.memory_space<vmem>>, vector<1x12x16xf32>,
    %197 = vector.extract_strided_slice %156 {offsets = [0, 180], sizes = [12, 16], strides = [1, 1]} : vector<12x286xf32> to vector<12x16xf32>
    %c1_148 = arith.constant 1 : index
    %c0_149 = arith.constant 0 : index
    %c160_150 = arith.constant 160 : index
    %198 = vector.load %arg4[%c1_148, %c0_149, %c160_150] : memref<2x12x256xf32, #tpu.memory_space<vmem>>, vector<1x12x16xf32>
    %199 = vector.shape_cast %198 : vector<1x12x16xf32> to vector<12x16xf32>
    %200 = vector.shape_cast %197 : vector<12x16xf32> to vector<1x12x16xf32>
    tpu.vector_store %arg4[%c1_148, %c0_149, %c160_150], %200 {strides = array<i32>} : memref<2x12x256xf32, #tpu.memory_space<vmem>>, vector<1x12x16xf32>,
    %201 = vector.extract_strided_slice %156 {offsets = [0, 198], sizes = [12, 16], strides = [1, 1]} : vector<12x286xf32> to vector<12x16xf32>
    %c1_151 = arith.constant 1 : index
    %c0_152 = arith.constant 0 : index
    %c176_153 = arith.constant 176 : index
    %202 = vector.load %arg4[%c1_151, %c0_152, %c176_153] : memref<2x12x256xf32, #tpu.memory_space<vmem>>, vector<1x12x16xf32>
    %203 = vector.shape_cast %202 : vector<1x12x16xf32> to vector<12x16xf32>
    %204 = vector.shape_cast %201 : vector<12x16xf32> to vector<1x12x16xf32>
    tpu.vector_store %arg4[%c1_151, %c0_152, %c176_153], %204 {strides = array<i32>} : memref<2x12x256xf32, #tpu.memory_space<vmem>>, vector<1x12x16xf32>,
    %205 = vector.extract_strided_slice %156 {offsets = [0, 216], sizes = [12, 16], strides = [1, 1]} : vector<12x286xf32> to vector<12x16xf32>
    %c1_154 = arith.constant 1 : index
    %c0_155 = arith.constant 0 : index
    %c192_156 = arith.constant 192 : index
    %206 = vector.load %arg4[%c1_154, %c0_155, %c192_156] : memref<2x12x256xf32, #tpu.memory_space<vmem>>, vector<1x12x16xf32>
    %207 = vector.shape_cast %206 : vector<1x12x16xf32> to vector<12x16xf32>
    %208 = vector.shape_cast %205 : vector<12x16xf32> to vector<1x12x16xf32>
    tpu.vector_store %arg4[%c1_154, %c0_155, %c192_156], %208 {strides = array<i32>} : memref<2x12x256xf32, #tpu.memory_space<vmem>>, vector<1x12x16xf32>,
    %209 = vector.extract_strided_slice %156 {offsets = [0, 234], sizes = [12, 16], strides = [1, 1]} : vector<12x286xf32> to vector<12x16xf32>
    %c1_157 = arith.constant 1 : index
    %c0_158 = arith.constant 0 : index
    %c208_159 = arith.constant 208 : index
    %210 = vector.load %arg4[%c1_157, %c0_158, %c208_159] : memref<2x12x256xf32, #tpu.memory_space<vmem>>, vector<1x12x16xf32>
    %211 = vector.shape_cast %210 : vector<1x12x16xf32> to vector<12x16xf32>
    %212 = vector.shape_cast %209 : vector<12x16xf32> to vector<1x12x16xf32>
    tpu.vector_store %arg4[%c1_157, %c0_158, %c208_159], %212 {strides = array<i32>} : memref<2x12x256xf32, #tpu.memory_space<vmem>>, vector<1x12x16xf32>,
    %213 = vector.extract_strided_slice %156 {offsets = [0, 252], sizes = [12, 16], strides = [1, 1]} : vector<12x286xf32> to vector<12x16xf32>
    %c1_160 = arith.constant 1 : index
    %c0_161 = arith.constant 0 : index
    %c224_162 = arith.constant 224 : index
    %214 = vector.load %arg4[%c1_160, %c0_161, %c224_162] : memref<2x12x256xf32, #tpu.memory_space<vmem>>, vector<1x12x16xf32>
    %215 = vector.shape_cast %214 : vector<1x12x16xf32> to vector<12x16xf32>
    %216 = vector.shape_cast %213 : vector<12x16xf32> to vector<1x12x16xf32>
    tpu.vector_store %arg4[%c1_160, %c0_161, %c224_162], %216 {strides = array<i32>} : memref<2x12x256xf32, #tpu.memory_space<vmem>>, vector<1x12x16xf32>,
    %217 = vector.extract_strided_slice %156 {offsets = [0, 270], sizes = [12, 16], strides = [1, 1]} : vector<12x286xf32> to vector<12x16xf32>
    %c1_163 = arith.constant 1 : index
    %c0_164 = arith.constant 0 : index
    %c240_165 = arith.constant 240 : index
    %218 = vector.load %arg4[%c1_163, %c0_164, %c240_165] : memref<2x12x256xf32, #tpu.memory_space<vmem>>, vector<1x12x16xf32>
    %219 = vector.shape_cast %218 : vector<1x12x16xf32> to vector<12x16xf32>
    %220 = vector.shape_cast %217 : vector<12x16xf32> to vector<1x12x16xf32>
    tpu.vector_store %arg4[%c1_163, %c0_164, %c240_165], %220 {strides = array<i32>} : memref<2x12x256xf32, #tpu.memory_space<vmem>>, vector<1x12x16xf32>,
    return
  }
  func.func @transform_0(%arg0: i32) -> (i32, i32, i32) {
    %c0_i32 = arith.constant 0 : i32
    %c0_i32_0 = arith.constant 0 : i32
    %c0_i32_1 = arith.constant 0 : i32
    return %arg0, %c0_i32, %c0_i32_0 : i32, i32, i32
  }
  func.func @transform_1(%arg0: i32) -> (i32, i32, i32) {
    %c0_i32 = arith.constant 0 : i32
    %c0_i32_0 = arith.constant 0 : i32
    %c0_i32_1 = arith.constant 0 : i32
    %c0_i32_2 = arith.constant 0 : i32
    return %c0_i32, %c0_i32_0, %c0_i32_1 : i32, i32, i32
  }
  func.func @transform_2(%arg0: i32) -> (i32, i32) {
    %c0_i32 = arith.constant 0 : i32
    %c0_i32_0 = arith.constant 0 : i32
    %c0_i32_1 = arith.constant 0 : i32
    return %c0_i32, %c0_i32_0 : i32, i32
  }
  func.func @transform_3(%arg0: i32) -> (i32, i32, i32) {
    %c0_i32 = arith.constant 0 : i32
    %c0_i32_0 = arith.constant 0 : i32
    %c0_i32_1 = arith.constant 0 : i32
    return %arg0, %c0_i32, %c0_i32_0 : i32, i32, i32
  }
}

</mosaic_0001>

<bundles_post_ra>
// kernel: quantile_regression_forward.1
= control target key start
LH: loop header
LB: loop body
LE: loop exit
PB: predicated region body
PF: predicated region fallthrough
CT: control target
= control target key end

     0   :  { %v3928_v2 = vmov 0.0   ;;  %s3929_s16 = smov 127   ;;  %s3930_s19 = smov 126   ;;  %vm56_vm0 = vcmask 31744   ;;  %v3937_v22 = vmov 0   ;;  %vm63_vm1 = vcmask 1043456   ;;  %s4976_s0 = inlined_call_operand.vmem [shape: f32[2,4,324], index: 0, kind: input, shape index: {}]   ;;  %s4977_s1 = inlined_call_operand.vmem [shape: f32[9,12,4], index: 1, kind: input, shape index: {}]   ;;  %s4978_s2 = inlined_call_operand.vmem [shape: f32[12,1], index: 2, kind: input, shape index: {}]   ;;  %s4979_s3 = inlined_call_operand.vmem [shape: f32[2,12,256], index: 3, kind: output, shape index: {}]  }
   0x1   :  { %v3973_v0 = vld [vmem:[%s4976_s0 + $0x8] sm:$0xf]  ;;  %v3978_v1 = vld [vmem:[%s4976_s0] sm:$0xff]  ;;  %134 = vmatprep.mubr.f32.mxu0 %v3928_v2  ;;  %v3998_v5 = vld [vmem:[%s4977_s1 + $0x10] sm:$0xff]  ;;  %s3931_s24 = smov 110   ;;  %s3932_s27 = smov 109   ;;  %3925 = vset.pattern.permute.xlu1 %v3937_v22 }
   0x2   :  { %51 = vrot.lane.b32.xlu0 %v3973_v0, %s3929_s16  ;;  %47 = vrot.lane.b32.xlu1 %v3978_v1, %s3929_s16  ;;  %v3987_v3 = vcombine.high %v3978_v1, %v3978_v1  ;;  %v387_v4 = vld [vmem:[%s4976_s0 + $0x8] sm:$0xf]  ;;  %s3933_s30 = smov 108   ;;  %s3934_s6 = smov 92   ;;  %v4053_v12 = vld [vmem:[%s4976_s0 + $0xc] sm:$0xff]  ;;  %vm53_vm2 = vcmask 1039360  }
   0x3   :  { %3814 = vmatprep.mubr.msk.f32.mxu1 %vm56_vm0, %v3998_v5  ;;  %v571_v6 = vld [vmem:[%s4976_s0 + $0x8] sm:$0xf]  ;;  %s3935_s9 = smov 91   ;;  %s3936_s12 = smov 90   ;;  %v4061_v13 = vcombine.high %v4053_v12, %v4053_v12  ;;  %v4066_v14 = vld [vmem:[%s4976_s0 + $0x14] sm:$0xf]  ;;  %3924 = vset.pattern.permute.xlu0 %v3937_v22 }
   0x4   :  { %v755_v7 = vld [vmem:[%s4976_s0 + $0x8] sm:$0xf]  ;;  %v3664_v15 = vld [vmem:[%s4976_s0 + $0x14] sm:$0xf]  ;;  %v14_v24 = vld [vmem:[%s4978_s2] sm:$0xff]  ;;  %vm397_vm3 = vcmask 1031168  }
   0x5   :  { %v939_v8 = vld [vmem:[%s4976_s0 + $0x8] sm:$0xf]  ;;  %v3673_v16 = vld [vmem:[%s4976_s0 + $0x14] sm:$0xf]  ;;  %v4139_v27 = vld [vmem:[%s4977_s1 + $0x18] sm:$0xf] }
   0x6   :  { %49 = vrot.lane.b32.xlu0 %v3987_v3, %s3929_s16  ;;  %395 = vrot.lane.b32.xlu1 %v387_v4, %s3930_s19  ;;  %v1123_v9 = vld [vmem:[%s4976_s0 + $0x8] sm:$0xf]  ;;  %v3682_v17 = vld [vmem:[%s4976_s0 + $0x14] sm:$0xf]  ;;  %vm581_vm4 = vcmask 900096   ;;  %vm765_vm5 = vcmask 891904  }
   0x7   :  { %v1307_v10 = vld [vmem:[%s4976_s0 + $0x8] sm:$0xf]  ;;  %v3691_v18 = vld [vmem:[%s4976_s0 + $0x14] sm:$0xf]  ;;  %v4153_v30 = vld [vmem:[%s4977_s1] sm:$0xff]  ;;  %vm949_vm6 = vcmask 883712  }
   0x8   :  { %v1491_v11 = vld [vmem:[%s4976_s0 + $0x8] sm:$0xf]  ;;  %v3700_v19 = vld [vmem:[%s4976_s0 + $0x14] sm:$0xf]  ;;  %v4178_v37 = vld [vmem:[%s4977_s1 + $0x20] sm:$0xff]  ;;  %vm1133_vm7 = vcmask 752640  }
   0x9   :  { %v3709_v20 = vld [vmem:[%s4976_s0 + $0x14] sm:$0xf]  ;;  %v15_v23 = vld [vmem:[%s4978_s2 + $0x8] sm:$0xf]  ;;  %v4223_v49 = vld [vmem:[%s4977_s1 + $0x38] sm:$0xf] }
   0xa   :  { %393 = vrot.lane.b32.xlu0 %v3987_v3, %s3930_s19  ;;  %391 = vrot.lane.b32.xlu1 %v3978_v1, %s3930_s19  ;;  %v3718_v21 = vld [vmem:[%s4976_s0 + $0x14] sm:$0xf]  ;;  %v4169_v35 = vld [vmem:[%s4977_s1 + $0x8] sm:$0xf]  ;;  %vm1317_vm8 = vcmask 744448   ;;  %vm1501_vm9 = vcmask 736256  }
   0xb   :  { %v4192_v40 = vld [vmem:[%s4977_s1 + $0x28] sm:$0xf]  ;;  %v4207_v45 = vld [vmem:[%s4977_s1 + $0x30] sm:$0xff]  ;;  %v4231_v51 = vld [vmem:[%s4977_s1 + $0x40] sm:$0xff]  ;;  %vm4980_vm10 = vcmask 130048   ;;  %vm4981_vm11 = vcmask 125952  }
   0xc   :  { %v4244_v54 = vld [vmem:[%s4977_s1 + $0x48] sm:$0xf]  ;;  %v4259_v59 = vld [vmem:[%s4977_s1 + $0x50] sm:$0xff]  ;;  %v4275_v63 = vld [vmem:[%s4977_s1 + $0x58] sm:$0xf]  ;;  %s3939_s21 = smov 98  }
   0xd   :  { %s3940_s22 = smov 124   ;;  %s3941_s25 = smov 122   ;;  %vm1702_vm12 = vcmask 261248   ;;  %vm1712_vm13 = vcmask 392448   ;;  %vm1722_vm14 = vcmask 523648   ;;  %vm1732_vm15 = vcmask 654848  }
   0xe   :  { %577 = vrot.lane.b32.xlu0 %v3987_v3, %s3931_s24  ;;  %579 = vrot.lane.b32.xlu1 %v571_v6, %s3931_s24  ;;  %v4296_v6 = vld [vmem:[%s4977_s1 + $0x68] sm:$0xf]  ;;  %s3942_s26 = smov 114   ;;  %s3943_s28 = smov 120  }
   0xf   :  { %s3944_s29 = smov 118   ;;  %s3946_s4 = smov 112  }
  0x10   :  { %s3947_s5 = smov 106   ;;  %s3948_s7 = smov 104  }
  0x12   :  { %575 = vrot.lane.b32.xlu0 %v3978_v1, %s3931_s24  ;;  %763 = vrot.lane.b32.xlu1 %v755_v7, %s3932_s27 }
  0x16   :  { %761 = vrot.lane.b32.xlu0 %v3987_v3, %s3932_s27  ;;  %759 = vrot.lane.b32.xlu1 %v3978_v1, %s3932_s27 }
  0x1a   :  { %945 = vrot.lane.b32.xlu0 %v3987_v3, %s3933_s30  ;;  %947 = vrot.lane.b32.xlu1 %v939_v8, %s3933_s30 }
  0x1e   :  { %943 = vrot.lane.b32.xlu0 %v3978_v1, %s3933_s30  ;;  %1131 = vrot.lane.b32.xlu1 %v1123_v9, %s3934_s6 }
  0x22   :  { %1129 = vrot.lane.b32.xlu0 %v3987_v3, %s3934_s6  ;;  %1127 = vrot.lane.b32.xlu1 %v3978_v1, %s3934_s6 }
  0x26   :  { %1313 = vrot.lane.b32.xlu0 %v3987_v3, %s3935_s9  ;;  %1315 = vrot.lane.b32.xlu1 %v1307_v10, %s3935_s9 }
  0x2a   :  { %1311 = vrot.lane.b32.xlu0 %v3978_v1, %s3935_s9  ;;  %1499 = vrot.lane.b32.xlu1 %v1491_v11, %s3936_s12  ;;  %v4311_v11 = vld [vmem:[%s4977_s1 + $0x70] sm:$0xff] }
  0x2e   :  { %1497 = vrot.lane.b32.xlu0 %v3987_v3, %s3936_s12  ;;  %1495 = vrot.lane.b32.xlu1 %v3978_v1, %s3936_s12 }
  0x32   :  { %1856 = vrot.lane.b32.xlu0 %v4061_v13, %s3929_s16  ;;  %1858 = vrot.lane.b32.xlu1 %v4066_v14, %s3929_s16 }
  0x36   :  { %1854 = vrot.lane.b32.xlu0 %v4053_v12, %s3929_s16  ;;  %2185 = vrot.lane.b32.xlu1 %v4061_v13, %s3930_s19 }
  0x3a   :  { %2187 = vrot.lane.b32.xlu0 %v3664_v15, %s3930_s19  ;;  %2183 = vrot.lane.b32.xlu1 %v4053_v12, %s3930_s19 }
  0x3e   :  { %2364 = vrot.lane.b32.xlu0 %v3673_v16, %s3931_s24  ;;  %2362 = vrot.lane.b32.xlu1 %v4061_v13, %s3931_s24 }
  0x42   :  { %2360 = vrot.lane.b32.xlu0 %v4053_v12, %s3931_s24  ;;  %2539 = vrot.lane.b32.xlu1 %v4061_v13, %s3932_s27 }
  0x46   :  { %2541 = vrot.lane.b32.xlu0 %v3682_v17, %s3932_s27  ;;  %2537 = vrot.lane.b32.xlu1 %v4053_v12, %s3932_s27  ;;  %s3945_s27 = smov 116  }
  0x4a   :  { %2718 = vrot.lane.b32.xlu0 %v3691_v18, %s3933_s30  ;;  %2716 = vrot.lane.b32.xlu1 %v4061_v13, %s3933_s30  ;;  %v4327_v18 = vld [vmem:[%s4977_s1 + $0x78] sm:$0xf] }
  0x4e   :  { %2714 = vrot.lane.b32.xlu0 %v4053_v12, %s3933_s30  ;;  %2893 = vrot.lane.b32.xlu1 %v4061_v13, %s3934_s6 }
  0x52   :  { %2895 = vrot.lane.b32.xlu0 %v3700_v19, %s3934_s6  ;;  %2891 = vrot.lane.b32.xlu1 %v4053_v12, %s3934_s6 }
  0x56   :  { %3072 = vrot.lane.b32.xlu0 %v3709_v20, %s3935_s9  ;;  %3070 = vrot.lane.b32.xlu1 %v4061_v13, %s3935_s9  ;;  %v4335_v20 = vld [vmem:[%s4977_s1 + $0x80] sm:$0xff] }
  0x5a   :  { %3068 = vrot.lane.b32.xlu0 %v4053_v12, %s3935_s9  ;;  %3247 = vrot.lane.b32.xlu1 %v4061_v13, %s3936_s12  ;;  %s3949_s9 = smov 102  }
  0x5e   :  { %3249 = vrot.lane.b32.xlu0 %v3718_v21, %s3936_s12  ;;  %3245 = vrot.lane.b32.xlu1 %v4053_v12, %s3936_s12 }
  0x62   :  { %1681 = vperm.xlu1 %3925, %v15_v23   ;;  %1676 = vperm.xlu0 %3924, %v14_v24   ;;  %v4348_v23 = vld [vmem:[%s4977_s1 + $0x88] sm:$0xf] }
  0x74   :  { %v52_v25 = vpop.permute.xlu0 %51  ;;  %v48_v26 = vpop.permute.xlu1 %47 }
  0x75   :  { %3812 = vmatprep.subr.msk.mxu1 %vm63_vm1, %v52_v25 }
  0x76   :  { %3813 = vmatpush3.msk.msra.mxu1 %vm63_vm1, %v52_v25 }
  0x77   :  { %3815 = vmatmul.mubr.msk.f32.vlgmr.msra.gmra.mxu1 %vm56_vm0, %v4139_v27  ;;  %3591 = vmatprep.subr.msk.mxu1 %vm63_vm1, %v3987_v3 }
  0x78   :  { %v50_v28 = vpop.permute.xlu0 %49  ;;  %298 = vmatprep.mubr.f32.mxu1 %v3928_v2  ;;  %v396_v29 = vpop.permute.xlu1 %395  ;;  %3592 = vmatpush1.msk.msra.mxu1 %vm63_vm1, %v3978_v1  ;;  %v4283_v1 = vld [vmem:[%s4977_s1 + $0x60] sm:$0xff]  ;;  %s3938_s1 = smov 100  }
  0x79   :  { %v55_v31 = vsel %vm53_vm2, %v50_v28, %v52_v25  ;;  %v54_v32 = vsel %vm53_vm2, %v48_v26, %v50_v28  ;;  %3822 = vmatprep.subr.msk.mxu1 %vm63_vm1, %v396_v29 }
  0x7a   :  { %3584 = vmatprep.subr.msk.mxu0 %vm63_vm1, %v55_v31 }
  0x7b   :  { %3585 = vmatpush1.msk.msra.mxu0 %vm63_vm1, %v54_v32  ;;  %3593 = vmatmul.mubr.msk.f32.vlgmr.msra.gmra.mxu1 %vm56_vm0, %v4153_v30 }
  0x7c   :  { %3586 = vmatmul.mubr.msk.f32.vlgmr.msra.gmra.mxu0 %vm56_vm0, %v3998_v5  ;;  %3817 = vmatprep.subr.msk.mxu0 %vm63_vm1, %v3973_v0  ;;  %v394_v33 = vpop.permute.xlu0 %393  ;;  %v392_v34 = vpop.permute.xlu1 %391 }
  0x7d   :  { %3818 = vmatpush3.msk.msra.mxu0 %vm63_vm1, %v3973_v0  ;;  %140 = vmatprep.mubr.f32.mxu0 %v3928_v2  ;;  %v399_v36 = vsel %vm397_vm3, %v394_v33, %v396_v29  ;;  %v398_v42 = vsel %vm397_vm3, %v392_v34, %v394_v33 }
  0x7e   :  { %304 = vmatprep.mubr.f32.mxu1 %v3928_v2  ;;  %3823 = vmatpush3.msk.msra.mxu1 %vm63_vm1, %v396_v29 }
  0x7f   :  { %3598 = vmatprep.subr.msk.mxu0 %vm63_vm1, %v399_v36  ;;  %3594 = vmatmul.mubr.msk.f32.gmra.mxu1 %vm56_vm0, %v4169_v35 }
  0x80   :  { %3587 = vmatmul.mubr.msk.f32.gmra.mxu0 %vm56_vm0, %v4139_v27  ;;  %v578_v38 = vpop.permute.xlu0 %577  ;;  %v580_v39 = vpop.permute.xlu1 %579  ;;  %3824 = vmatprep.mubr.msk.f32.mxu1 %vm56_vm0, %v4178_v37 }
  0x81   :  { %3819 = vmatprep.mubr.msk.f32.mxu0 %vm56_vm0, %v4153_v30  ;;  %v583_v41 = vsel %vm581_vm4, %v578_v38, %v580_v39 }
  0x82   :  { %3605 = vmatprep.subr.msk.mxu1 %vm63_vm1, %v583_v41 }
  0x83   :  { %3825 = vmatmul.mubr.msk.f32.vlgmr.msra.gmra.mxu1 %vm56_vm0, %v4192_v40 }
  0x84   :  { %3820 = vmatmul.mubr.msk.f32.vlgmr.msra.gmra.mxu0 %vm56_vm0, %v4169_v35  ;;  %v576_v43 = vpop.permute.xlu0 %575  ;;  %v764_v44 = vpop.permute.xlu1 %763  ;;  %660 = vmatprep.mubr.f32.mxu1 %v3928_v2 }
  0x85   :  { %3599 = vmatpush1.msk.msra.mxu0 %vm63_vm1, %v398_v42  ;;  %v582_v46 = vsel %vm581_vm4, %v576_v43, %v578_v38  ;;  %476 = vmatprep.mubr.f32.mxu0 %v3928_v2 }
  0x86   :  { %3606 = vmatpush1.msk.msra.mxu1 %vm63_vm1, %v582_v46  ;;  %3827 = vmatprep.subr.msk.mxu0 %vm63_vm1, %v580_v39 }
  0x87   :  { %3607 = vmatmul.mubr.msk.f32.vlgmr.msra.gmra.mxu1 %vm56_vm0, %v4207_v45  ;;  %3832 = vmatprep.subr.msk.mxu1 %vm63_vm1, %v764_v44 }
  0x88   :  { %3600 = vmatmul.mubr.msk.f32.vlgmr.msra.gmra.mxu0 %vm56_vm0, %v4178_v37  ;;  %v762_v47 = vpop.permute.xlu0 %761  ;;  %v760_v48 = vpop.permute.xlu1 %759  ;;  %3833 = vmatpush3.msk.msra.mxu1 %vm63_vm1, %v764_v44 }
  0x89   :  { %3828 = vmatpush3.msk.msra.mxu0 %vm63_vm1, %v580_v39  ;;  %482 = vmatprep.mubr.f32.mxu0 %v3928_v2  ;;  %v767_v50 = vsel %vm765_vm5, %v762_v47, %v764_v44  ;;  %v766_v56 = vsel %vm765_vm5, %v760_v48, %v762_v47 }
  0x8a   :  { %3612 = vmatprep.subr.msk.mxu0 %vm63_vm1, %v767_v50  ;;  %666 = vmatprep.mubr.f32.mxu1 %v3928_v2 }
  0x8b   :  { %3608 = vmatmul.mubr.msk.f32.gmra.mxu1 %vm56_vm0, %v4223_v49 }
  0x8c   :  { %3601 = vmatmul.mubr.msk.f32.gmra.mxu0 %vm56_vm0, %v4192_v40  ;;  %v946_v52 = vpop.permute.xlu0 %945  ;;  %v948_v53 = vpop.permute.xlu1 %947  ;;  %3834 = vmatprep.mubr.msk.f32.mxu1 %vm56_vm0, %v4231_v51 }
  0x8d   :  { %3829 = vmatprep.mubr.msk.f32.mxu0 %vm56_vm0, %v4207_v45  ;;  %v951_v55 = vsel %vm949_vm6, %v946_v52, %v948_v53 }
  0x8e   :  { %3619 = vmatprep.subr.msk.mxu1 %vm63_vm1, %v951_v55 }
  0x8f   :  { %3835 = vmatmul.mubr.msk.f32.vlgmr.msra.gmra.mxu1 %vm56_vm0, %v4244_v54 }
  0x90   :  { %3830 = vmatmul.mubr.msk.f32.vlgmr.msra.gmra.mxu0 %vm56_vm0, %v4223_v49  ;;  %v944_v57 = vpop.permute.xlu0 %943  ;;  %v1132_v58 = vpop.permute.xlu1 %1131  ;;  %1028 = vmatprep.mubr.f32.mxu1 %v3928_v2 }
  0x91   :  { %3613 = vmatpush1.msk.msra.mxu0 %vm63_vm1, %v766_v56  ;;  %v950_v60 = vsel %vm949_vm6, %v944_v57, %v946_v52  ;;  %844 = vmatprep.mubr.f32.mxu0 %v3928_v2 }
  0x92   :  { %3620 = vmatpush1.msk.msra.mxu1 %vm63_vm1, %v950_v60  ;;  %3837 = vmatprep.subr.msk.mxu0 %vm63_vm1, %v948_v53 }
  0x93   :  { %3621 = vmatmul.mubr.msk.f32.vlgmr.msra.gmra.mxu1 %vm56_vm0, %v4259_v59  ;;  %3842 = vmatprep.subr.msk.mxu1 %vm63_vm1, %v1132_v58 }
  0x94   :  { %3614 = vmatmul.mubr.msk.f32.vlgmr.msra.gmra.mxu0 %vm56_vm0, %v4231_v51  ;;  %v1130_v61 = vpop.permute.xlu0 %1129  ;;  %v1128_v62 = vpop.permute.xlu1 %1127  ;;  %3843 = vmatpush3.msk.msra.mxu1 %vm63_vm1, %v1132_v58 }
  0x95   :  { %3838 = vmatpush3.msk.msra.mxu0 %vm63_vm1, %v948_v53  ;;  %850 = vmatprep.mubr.f32.mxu0 %v3928_v2  ;;  %v1135_v0 = vsel %vm1133_vm7, %v1130_v61, %v1132_v58  ;;  %v1134_v8 = vsel %vm1133_vm7, %v1128_v62, %v1130_v61 }
  0x96   :  { %3626 = vmatprep.subr.msk.mxu0 %vm63_vm1, %v1135_v0  ;;  %1034 = vmatprep.mubr.f32.mxu1 %v3928_v2 }
  0x97   :  { %3622 = vmatmul.mubr.msk.f32.gmra.mxu1 %vm56_vm0, %v4275_v63 }
  0x98   :  { %3615 = vmatmul.mubr.msk.f32.gmra.mxu0 %vm56_vm0, %v4244_v54  ;;  %v1314_v3 = vpop.permute.xlu0 %1313  ;;  %v1316_v4 = vpop.permute.xlu1 %1315  ;;  %3844 = vmatprep.mubr.msk.f32.mxu1 %vm56_vm0, %v4283_v1 }
  0x99   :  { %3839 = vmatprep.mubr.msk.f32.mxu0 %vm56_vm0, %v4259_v59  ;;  %v1319_v7 = vsel %vm1317_vm8, %v1314_v3, %v1316_v4 }
  0x9a   :  { %3633 = vmatprep.subr.msk.mxu1 %vm63_vm1, %v1319_v7 }
  0x9b   :  { %3845 = vmatmul.mubr.msk.f32.vlgmr.msra.gmra.mxu1 %vm56_vm0, %v4296_v6 }
  0x9c   :  { %3840 = vmatmul.mubr.msk.f32.vlgmr.msra.gmra.mxu0 %vm56_vm0, %v4275_v63  ;;  %v1312_v9 = vpop.permute.xlu0 %1311  ;;  %1396 = vmatprep.mubr.f32.mxu1 %v3928_v2  ;;  %v1500_v10 = vpop.permute.xlu1 %1499 }
  0x9d   :  { %3627 = vmatpush1.msk.msra.mxu0 %vm63_vm1, %v1134_v8  ;;  %v1318_v15 = vsel %vm1317_vm8, %v1312_v9, %v1314_v3  ;;  %1212 = vmatprep.mubr.f32.mxu0 %v3928_v2 }
  0x9e   :  { %3634 = vmatpush1.msk.msra.mxu1 %vm63_vm1, %v1318_v15  ;;  %3847 = vmatprep.subr.msk.mxu0 %vm63_vm1, %v1316_v4 }
  0x9f   :  { %3635 = vmatmul.mubr.msk.f32.vlgmr.msra.gmra.mxu1 %vm56_vm0, %v4311_v11  ;;  %3852 = vmatprep.subr.msk.mxu1 %vm63_vm1, %v1500_v10 }
  0xa0   :  { %3628 = vmatmul.mubr.msk.f32.vlgmr.msra.gmra.mxu0 %vm56_vm0, %v4283_v1  ;;  %v1498_v16 = vpop.permute.xlu0 %1497  ;;  %3853 = vmatpush3.msk.msra.mxu1 %vm63_vm1, %v1500_v10  ;;  %v1496_v17 = vpop.permute.xlu1 %1495 }
  0xa1   :  { %3848 = vmatpush3.msk.msra.mxu0 %vm63_vm1, %v1316_v4  ;;  %1218 = vmatprep.mubr.f32.mxu0 %v3928_v2  ;;  %v1503_v19 = vsel %vm1501_vm9, %v1498_v16, %v1500_v10  ;;  %v1502_v25 = vsel %vm1501_vm9, %v1496_v17, %v1498_v16 }
  0xa2   :  { %1402 = vmatprep.mubr.f32.mxu1 %v3928_v2  ;;  %3640 = vmatprep.subr.msk.mxu0 %vm63_vm1, %v1503_v19 }
  0xa3   :  { %3636 = vmatmul.mubr.msk.f32.gmra.mxu1 %vm56_vm0, %v4327_v18 }
  0xa4   :  { %3629 = vmatmul.mubr.msk.f32.gmra.mxu0 %vm56_vm0, %v4296_v6  ;;  %v1857_v21 = vpop.permute.xlu0 %1856  ;;  %3854 = vmatprep.mubr.msk.f32.mxu1 %vm56_vm0, %v4335_v20  ;;  %v1859_v22 = vpop.permute.xlu1 %1858 }
  0xa5   :  { %3849 = vmatprep.mubr.msk.f32.mxu0 %vm56_vm0, %v4311_v11  ;;  %v1861_v24 = vsel %vm53_vm2, %v1857_v21, %v1859_v22 }
  0xa6   :  { %3649 = vmatprep.subr.msk.mxu1 %vm63_vm1, %v1861_v24 }
  0xa7   :  { %3855 = vmatmul.mubr.msk.f32.vlgmr.msra.gmra.mxu1 %vm56_vm0, %v4348_v23 }
  0xa8   :  { %3850 = vmatmul.mubr.msk.f32.vlgmr.msra.gmra.mxu0 %vm56_vm0, %v4327_v18  ;;  %v1855_v26 = vpop.permute.xlu0 %1854  ;;  %1932 = vmatprep.mubr.f32.mxu1 %v3928_v2  ;;  %v2186_v28 = vpop.permute.xlu1 %2185 }
  0xa9   :  { %3641 = vmatpush1.msk.msra.mxu0 %vm63_vm1, %v1502_v25  ;;  %1580 = vmatprep.mubr.f32.mxu0 %v3928_v2  ;;  %v1860_v29 = vsel %vm53_vm2, %v1855_v26, %v1857_v21  ;;  %vm1714_vm2 = vcmask 388352  }
  0xaa   :  { %3650 = vmatpush1.msk.msra.mxu1 %vm63_vm1, %v1860_v29  ;;  %3857 = vmatprep.subr.msk.mxu0 %vm63_vm1, %v1859_v22 }
  0xab   :  { %3651 = vmatmul.mubr.msk.f32.vlgmr.msra.gmra.mxu1 %vm56_vm0, %v3998_v5  ;;  %3862 = vmatprep.subr.msk.mxu1 %vm63_vm1, %v4066_v14 }
  0xac   :  { %3642 = vmatmul.mubr.msk.f32.vlgmr.msra.gmra.mxu0 %vm56_vm0, %v4335_v20  ;;  %1938 = vmatprep.mubr.f32.mxu1 %v3928_v2  ;;  %v2188_v31 = vpop.permute.xlu0 %2187  ;;  %v2184_v32 = vpop.permute.xlu1 %2183 }
  0xad   :  { %1586 = vmatprep.mubr.f32.mxu0 %v3928_v2  ;;  %3858 = vmatpush3.msk.msra.mxu0 %vm63_vm1, %v1859_v22  ;;  %v2190_v33 = vsel %vm397_vm3, %v2186_v28, %v2188_v31 }
  0xae   :  { %3863 = vmatpush3.msk.msra.mxu1 %vm63_vm1, %v4066_v14  ;;  %3656 = vmatprep.subr.msk.mxu0 %vm63_vm1, %v4061_v13  ;;  %v2189_v14 = vsel %vm397_vm3, %v2184_v32, %v2186_v28  ;;  %vm4983_vm3 = vcmask 917248  }
  0xaf   :  { %3652 = vmatmul.mubr.msk.f32.gmra.mxu1 %vm56_vm0, %v4139_v27  ;;  %3665 = vmatprep.subr.msk.mxu1 %vm63_vm1, %v2190_v33 }
  0xb0   :  { %3643 = vmatmul.mubr.msk.f32.gmra.mxu0 %vm56_vm0, %v4348_v23  ;;  %3864 = vmatprep.mubr.msk.f32.mxu1 %vm56_vm0, %v4153_v30  ;;  %v2365_v34 = vpop.permute.xlu0 %2364  ;;  %v2363_v36 = vpop.permute.xlu1 %2362 }
  0xb1   :  { %3859 = vmatprep.mubr.msk.f32.mxu0 %vm56_vm0, %v3998_v5  ;;  %v2367_v5 = vsel %vm581_vm4, %v2363_v36, %v2365_v34 }
  0xb3   :  { %3865 = vmatmul.mubr.msk.f32.vlgmr.msra.gmra.mxu1 %vm56_vm0, %v4169_v35 }
  0xb4   :  { %3860 = vmatmul.mubr.msk.f32.vlgmr.msra.gmra.mxu0 %vm56_vm0, %v4139_v27  ;;  %3666 = vmatpush1.msk.msra.mxu1 %vm63_vm1, %v2189_v14  ;;  %v2361_v13 = vpop.permute.xlu0 %2360  ;;  %v2540_v38 = vpop.permute.xlu1 %2539 }
  0xb5   :  { %3657 = vmatpush1.msk.msra.mxu0 %vm63_vm1, %v4053_v12  ;;  %2090 = vmatprep.mubr.f32.mxu0 %v3928_v2  ;;  %v2366_v43 = vsel %vm581_vm4, %v2361_v13, %v2363_v36  ;;  %vm1724_vm4 = vcmask 519552  }
  0xb6   :  { %2261 = vmatprep.mubr.f32.mxu1 %v3928_v2  ;;  %3867 = vmatprep.subr.msk.mxu0 %vm63_vm1, %v2188_v31 }
  0xb7   :  { %3667 = vmatmul.mubr.msk.f32.vlgmr.msra.gmra.mxu1 %vm56_vm0, %v4178_v37  ;;  %3872 = vmatprep.subr.msk.mxu1 %vm63_vm1, %v2365_v34 }
  0xb8   :  { %3658 = vmatmul.mubr.msk.f32.vlgmr.msra.gmra.mxu0 %vm56_vm0, %v4153_v30  ;;  %2267 = vmatprep.mubr.f32.mxu1 %v3928_v2  ;;  %v2542_v27 = vpop.permute.xlu0 %2541  ;;  %v2538_v12 = vpop.permute.xlu1 %2537 }
  0xb9   :  { %2096 = vmatprep.mubr.f32.mxu0 %v3928_v2  ;;  %3868 = vmatpush3.msk.msra.mxu0 %vm63_vm1, %v2188_v31  ;;  %v2544_v39 = vsel %vm765_vm5, %v2540_v38, %v2542_v27  ;;  %v2543_v42 = vsel %vm765_vm5, %v2538_v12, %v2540_v38  ;;  %vm1766_vm5 = vcmask 932864  }
  0xba   :  { %3873 = vmatpush3.msk.msra.mxu1 %vm63_vm1, %v2365_v34  ;;  %3674 = vmatprep.subr.msk.mxu0 %vm63_vm1, %v2367_v5 }
  0xbb   :  { %3668 = vmatmul.mubr.msk.f32.gmra.mxu1 %vm56_vm0, %v4192_v40  ;;  %3683 = vmatprep.subr.msk.mxu1 %vm63_vm1, %v2544_v39 }
  0xbc   :  { %3659 = vmatmul.mubr.msk.f32.gmra.mxu0 %vm56_vm0, %v4169_v35  ;;  %3874 = vmatprep.mubr.msk.f32.mxu1 %vm56_vm0, %v4207_v45  ;;  %v2719_v30 = vpop.permute.xlu0 %2718  ;;  %v2717_v41 = vpop.permute.xlu1 %2716 }
  0xbd   :  { %3869 = vmatprep.mubr.msk.f32.mxu0 %vm56_vm0, %v4178_v37  ;;  %v2721_v37 = vsel %vm949_vm6, %v2717_v41, %v2719_v30 }
  0xbf   :  { %3875 = vmatmul.mubr.msk.f32.vlgmr.msra.gmra.mxu1 %vm56_vm0, %v4223_v49 }
  0xc0   :  { %3870 = vmatmul.mubr.msk.f32.vlgmr.msra.gmra.mxu0 %vm56_vm0, %v4192_v40  ;;  %3684 = vmatpush1.msk.msra.mxu1 %vm63_vm1, %v2543_v42  ;;  %v2715_v35 = vpop.permute.xlu0 %2714  ;;  %v2894_v44 = vpop.permute.xlu1 %2893 }
  0xc1   :  { %3675 = vmatpush1.msk.msra.mxu0 %vm63_vm1, %v2366_v43  ;;  %2438 = vmatprep.mubr.f32.mxu0 %v3928_v2  ;;  %v2720_v52 = vsel %vm949_vm6, %v2715_v35, %v2717_v41  ;;  %vm1771_vm6 = vcmask 1048448  }
  0xc2   :  { %2615 = vmatprep.mubr.f32.mxu1 %v3928_v2  ;;  %3877 = vmatprep.subr.msk.mxu0 %vm63_vm1, %v2542_v27 }
  0xc3   :  { %3685 = vmatmul.mubr.msk.f32.vlgmr.msra.gmra.mxu1 %vm56_vm0, %v4231_v51  ;;  %3882 = vmatprep.subr.msk.mxu1 %vm63_vm1, %v2719_v30 }
  0xc4   :  { %3676 = vmatmul.mubr.msk.f32.vlgmr.msra.gmra.mxu0 %vm56_vm0, %v4207_v45  ;;  %2621 = vmatprep.mubr.f32.mxu1 %v3928_v2  ;;  %v2896_v40 = vpop.permute.xlu0 %2895  ;;  %v2892_v46 = vpop.permute.xlu1 %2891 }
  0xc5   :  { %2444 = vmatprep.mubr.f32.mxu0 %v3928_v2  ;;  %3878 = vmatpush3.msk.msra.mxu0 %vm63_vm1, %v2542_v27  ;;  %v2898_v47 = vsel %vm1133_vm7, %v2894_v44, %v2896_v40  ;;  %v2897_v50 = vsel %vm1133_vm7, %v2892_v46, %v2894_v44  ;;  %vm1734_vm7 = vcmask 650752  }
  0xc6   :  { %3883 = vmatpush3.msk.msra.mxu1 %vm63_vm1, %v2719_v30  ;;  %3692 = vmatprep.subr.msk.mxu0 %vm63_vm1, %v2721_v37 }
  0xc7   :  { %3686 = vmatmul.mubr.msk.f32.gmra.mxu1 %vm56_vm0, %v4244_v54  ;;  %3701 = vmatprep.subr.msk.mxu1 %vm63_vm1, %v2898_v47 }
  0xc8   :  { %3677 = vmatmul.mubr.msk.f32.gmra.mxu0 %vm56_vm0, %v4223_v49  ;;  %3884 = vmatprep.mubr.msk.f32.mxu1 %vm56_vm0, %v4259_v59  ;;  %v3073_v45 = vpop.permute.xlu0 %3072  ;;  %v3071_v48 = vpop.permute.xlu1 %3070 }
  0xc9   :  { %3879 = vmatprep.mubr.msk.f32.mxu0 %vm56_vm0, %v4231_v51  ;;  %v3075_v51 = vsel %vm1317_vm8, %v3071_v48, %v3073_v45 }
  0xcb   :  { %3885 = vmatmul.mubr.msk.f32.vlgmr.msra.gmra.mxu1 %vm56_vm0, %v4275_v63 }
  0xcc   :  { %3880 = vmatmul.mubr.msk.f32.vlgmr.msra.gmra.mxu0 %vm56_vm0, %v4244_v54  ;;  %3702 = vmatpush1.msk.msra.mxu1 %vm63_vm1, %v2897_v50  ;;  %v3069_v49 = vpop.permute.xlu0 %3068  ;;  %v3248_v53 = vpop.permute.xlu1 %3247 }
  0xcd   :  { %3693 = vmatpush1.msk.msra.mxu0 %vm63_vm1, %v2720_v52  ;;  %2792 = vmatprep.mubr.f32.mxu0 %v3928_v2  ;;  %v3074_v58 = vsel %vm1317_vm8, %v3069_v49, %v3071_v48  ;;  %vm1744_vm8 = vcmask 781952  }
  0xce   :  { %2969 = vmatprep.mubr.f32.mxu1 %v3928_v2  ;;  %3887 = vmatprep.subr.msk.mxu0 %vm63_vm1, %v2896_v40 }
  0xcf   :  { %3703 = vmatmul.mubr.msk.f32.vlgmr.msra.gmra.mxu1 %vm56_vm0, %v4283_v1  ;;  %3892 = vmatprep.subr.msk.mxu1 %vm63_vm1, %v3073_v45 }
  0xd0   :  { %3694 = vmatmul.mubr.msk.f32.vlgmr.msra.gmra.mxu0 %vm56_vm0, %v4259_v59  ;;  %2975 = vmatprep.mubr.f32.mxu1 %v3928_v2  ;;  %v3250_v54 = vpop.permute.xlu0 %3249  ;;  %v3246_v56 = vpop.permute.xlu1 %3245 }
  0xd1   :  { %2798 = vmatprep.mubr.f32.mxu0 %v3928_v2  ;;  %3888 = vmatpush3.msk.msra.mxu0 %vm63_vm1, %v2896_v40  ;;  %v3252_v55 = vsel %vm1501_vm9, %v3248_v53, %v3250_v54  ;;  %v3251_v57 = vsel %vm1501_vm9, %v3246_v56, %v3248_v53  ;;  %vm1754_vm9 = vcmask 913152  }
  0xd2   :  { %3893 = vmatpush3.msk.msra.mxu1 %vm63_vm1, %v3073_v45  ;;  %3710 = vmatprep.subr.msk.mxu0 %vm63_vm1, %v3075_v51 }
  0xd3   :  { %3704 = vmatmul.mubr.msk.f32.gmra.mxu1 %vm56_vm0, %v4296_v6  ;;  %3719 = vmatprep.subr.msk.mxu1 %vm63_vm1, %v3252_v55 }
  0xd4   :  { %3695 = vmatmul.mubr.msk.f32.gmra.mxu0 %vm56_vm0, %v4275_v63  ;;  %3894 = vmatprep.mubr.msk.f32.mxu1 %vm56_vm0, %v4311_v11 }
  0xd5   :  { %3889 = vmatprep.mubr.msk.f32.mxu0 %vm56_vm0, %v4283_v1 }
  0xd7   :  { %3895 = vmatmul.mubr.msk.f32.vlgmr.msra.gmra.mxu1 %vm56_vm0, %v4327_v18 }
  0xd8   :  { %3890 = vmatmul.mubr.msk.f32.vlgmr.msra.gmra.mxu0 %vm56_vm0, %v4296_v6  ;;  %3720 = vmatpush1.msk.msra.mxu1 %vm63_vm1, %v3251_v57 }
  0xd9   :  { %3711 = vmatpush1.msk.msra.mxu0 %vm63_vm1, %v3074_v58  ;;  %3146 = vmatprep.mubr.f32.mxu0 %v3928_v2 }
  0xda   :  { %3323 = vmatprep.mubr.f32.mxu1 %v3928_v2  ;;  %3897 = vmatprep.subr.msk.mxu0 %vm63_vm1, %v3250_v54 }
  0xdb   :  { %3721 = vmatmul.mubr.msk.f32.vlgmr.msra.gmra.mxu1 %vm56_vm0, %v4335_v20 }
  0xdc   :  { %3712 = vmatmul.mubr.msk.f32.vlgmr.msra.gmra.mxu0 %vm56_vm0, %v4311_v11  ;;  %3329 = vmatprep.mubr.f32.mxu1 %v3928_v2 }
  0xdd   :  { %3152 = vmatprep.mubr.f32.mxu0 %v3928_v2  ;;  %3898 = vmatpush3.msk.msra.mxu0 %vm63_vm1, %v3250_v54  ;;  %vm1742_vm1 = vcmask 786048  }
  0xdf   :  { %3722 = vmatmul.mubr.msk.f32.gmra.mxu1 %vm56_vm0, %v4348_v23 }
  0xe0   :  { %3713 = vmatmul.mubr.msk.f32.gmra.mxu0 %vm56_vm0, %v4327_v18 }
  0xe1   :  { %3899 = vmatprep.mubr.msk.f32.mxu0 %vm56_vm0, %v4335_v20 }
  0xe4   :  { %3900 = vmatmul.mubr.msk.f32.vlgmr.msra.gmra.mxu0 %vm56_vm0, %v4348_v23  ;;  %vm1704_vm0 = vcmask 257152  }
 0x137   :  { %v3816_v59 = vpop.f32.mrf.mxu1 }
 0x139   :  { %v213_v60 = vpop.f32.mrf.mxu1 }
 0x13b   :  { %v300_v61 = vpop.f32.mrf.mxu1 }
 0x13c   :  { %v136_v62 = vpop.f32.mrf.mxu0 }
 0x13d   :  { %v302_v63 = vpop.f32.mrf.mxu1  ;;  %v301_v36 = vadd.f32 %v300_v61, %v136_v62 }
 0x13e   :  { %v138_v2 = vpop.f32.mrf.mxu0 }
 0x13f   :  { %v306_v0 = vpop.f32.mrf.mxu1  ;;  %v303_v47 = vadd.f32 %v302_v63, %v138_v2 }
 0x140   :  { %v142_v1 = vpop.f32.mrf.mxu0 }
 0x141   :  { %v308_v3 = vpop.f32.mrf.mxu1  ;;  %v307_v30 = vadd.f32 %v306_v0, %v142_v1 }
 0x142   :  { %v144_v4 = vpop.f32.mrf.mxu0 }
 0x143   :  { %v4510_v6 = vadd.f32 %v308_v3, %v144_v4  ;;  %v3826_v7 = vpop.f32.mrf.mxu1 }
 0x144   :  { %v3821_v8 = vpop.f32.mrf.mxu0 }
 0x145   :  { %v555_v9 = vpop.f32.mrf.mxu1  ;;  %v383_v32 = vadd.f32 %v3821_v8, %v3816_v59 }
 0x146   :  { %v377_v10 = vpop.f32.mrf.mxu0 }
 0x147   :  { %v662_v11 = vpop.f32.mrf.mxu1  ;;  %v378_v38 = vadd.f32 %v377_v10, %v213_v60  ;;  %v569_v5 = vadd.f32 %v3826_v7, %v383_v32 }
 0x148   :  { %v478_v15 = vpop.f32.mrf.mxu0 }
 0x149   :  { %v664_v16 = vpop.f32.mrf.mxu1  ;;  %v564_v27 = vadd.f32 %v478_v15, %v301_v36  ;;  %v566_v35 = vadd.f32 %v555_v9, %v378_v38 }
 0x14a   :  { %v480_v17 = vpop.f32.mrf.mxu0 }
 0x14b   :  { %v668_v18 = vpop.f32.mrf.mxu1  ;;  %v748_v44 = vadd.f32 %v662_v11, %v564_v27  ;;  %v565_v53 = vadd.f32 %v480_v17, %v303_v47  ;;  %v4524_v11 = vpop.permute.xlu1 %1681 }
 0x14c   :  { %v484_v19 = vpop.f32.mrf.mxu0 }
 0x14d   :  { %v4512_v20 = vpop.f32.mrf.mxu1  ;;  %v567_v37 = vadd.f32 %v484_v19, %v307_v30  ;;  %v749_v62 = vadd.f32 %v664_v16, %v565_v53  ;;  %v4528_v16 = vpop.permute.xlu0 %1676 }
 0x14e   :  { %v4514_v21 = vpop.f32.mrf.mxu0 }
 0x14f   :  { %v3836_v22 = vpop.f32.mrf.mxu1  ;;  %v751_v51 = vadd.f32 %v668_v18, %v567_v37 }
 0x150   :  { %v3831_v23 = vpop.f32.mrf.mxu0 }
 0x151   :  { %v923_v24 = vpop.f32.mrf.mxu1  ;;  %v753_v41 = vadd.f32 %v3831_v23, %v569_v5 }
 0x152   :  { %v739_v25 = vpop.f32.mrf.mxu0 }
 0x153   :  { %v1030_v26 = vpop.f32.mrf.mxu1  ;;  %v750_v45 = vadd.f32 %v739_v25, %v566_v35  ;;  %v937_v48 = vadd.f32 %v3836_v22, %v753_v41 }
 0x154   :  { %v846_v28 = vpop.f32.mrf.mxu0 }
 0x155   :  { %v1032_v29 = vpop.f32.mrf.mxu1  ;;  %v932_v50 = vadd.f32 %v846_v28, %v748_v44  ;;  %v934_v57 = vadd.f32 %v923_v24, %v750_v45 }
 0x156   :  { %v848_v31 = vpop.f32.mrf.mxu0 }
 0x157   :  { %v1036_v33 = vpop.f32.mrf.mxu1  ;;  %v1116_v58 = vadd.f32 %v1030_v26, %v932_v50  ;;  %v933_v4 = vadd.f32 %v848_v31, %v749_v62 }
 0x158   :  { %v852_v34 = vpop.f32.mrf.mxu0 }
 0x159   :  { %v4516_v14 = vpop.f32.mrf.mxu1  ;;  %v935_v59 = vadd.f32 %v852_v34, %v751_v51  ;;  %v1117_v24 = vadd.f32 %v1032_v29, %v933_v4 }
 0x15a   :  { %v4518_v13 = vpop.f32.mrf.mxu0 }
 0x15b   :  { %v3846_v12 = vpop.f32.mrf.mxu1  ;;  %v1119_v7 = vadd.f32 %v1036_v33, %v935_v59 }
 0x15c   :  { %v3841_v39 = vpop.f32.mrf.mxu0 }
 0x15d   :  { %v1291_v42 = vpop.f32.mrf.mxu1  ;;  %v1121_v54 = vadd.f32 %v3841_v39, %v937_v48 }
 0x15e   :  { %v1107_v43 = vpop.f32.mrf.mxu0 }
 0x15f   :  { %v1398_v40 = vpop.f32.mrf.mxu1  ;;  %v1118_v0 = vadd.f32 %v1107_v43, %v934_v57  ;;  %v1305_v63 = vadd.f32 %v3846_v12, %v1121_v54 }
 0x160   :  { %v1214_v46 = vpop.f32.mrf.mxu0 }
 0x161   :  { %v1400_v52 = vpop.f32.mrf.mxu1  ;;  %v1300_v2 = vadd.f32 %v1214_v46, %v1116_v58  ;;  %v1302_v15 = vadd.f32 %v1291_v42, %v1118_v0 }
 0x162   :  { %v1216_v49 = vpop.f32.mrf.mxu0 }
 0x163   :  { %v1404_v55 = vpop.f32.mrf.mxu1  ;;  %v1484_v17 = vadd.f32 %v1398_v40, %v1300_v2  ;;  %v1301_v33 = vadd.f32 %v1216_v49, %v1117_v24 }
 0x164   :  { %v1220_v56 = vpop.f32.mrf.mxu0 }
 0x165   :  { %v4520_v60 = vpop.f32.mrf.mxu1  ;;  %v1303_v18 = vadd.f32 %v1220_v56, %v1119_v7  ;;  %v1485_v30 = vadd.f32 %v1400_v52, %v1301_v33 }
 0x166   :  { %v4522_v61 = vpop.f32.mrf.mxu0 }
 0x167   :  { %v3856_v1 = vpop.f32.mrf.mxu1  ;;  %v1487_v34 = vadd.f32 %v1404_v55, %v1303_v18  ;;  %v568_v55 = vadd.f32 %v4514_v21, %v4510_v6 }
 0x168   :  { %v3851_v3 = vpop.f32.mrf.mxu0 }
 0x169   :  { %v1489_v8 = vadd.f32 %v3851_v3, %v1305_v63  ;;  %v1659_v9 = vpop.f32.mrf.mxu1  ;;  %v752_v0 = vadd.f32 %v4512_v20, %v568_v55 }
 0x16a   :  { %v1475_v10 = vpop.f32.mrf.mxu0 }
 0x16b   :  { %v1673_v19 = vadd.f32 %v3856_v1, %v1489_v8  ;;  %v4526_v22 = vpop.f32.mrf.mxu1  ;;  %v1486_v25 = vadd.f32 %v1475_v10, %v1302_v15  ;;  %v936_v21 = vadd.f32 %v4518_v13, %v752_v0 }
 0x16c   :  { %v1582_v23 = vpop.f32.mrf.mxu0 }
 0x16d   :  { %v1668_v26 = vadd.f32 %v1582_v23, %v1484_v17  ;;  %v1689_v28 = vadd.f32 %v4524_v11, %v1673_v19  ;;  %v4531_v31 = vpop.f32.mrf.mxu1  ;;  %v1670_v29 = vadd.f32 %v1659_v9, %v1486_v25  ;;  %v1120_v9 = vadd.f32 %v4516_v14, %v936_v21 }
 0x16e   :  { %v1584_v32 = vpop.f32.mrf.mxu0 }
 0x16f   :  { %v4534_v36 = vadd.f32 %v4528_v16, %v1668_v26  ;;  %1831 = vrot.lane.b32.xlu0 %v1689_v28, %s3938_s1  ;;  %v4537_v38 = vpop.f32.mrf.mxu1  ;;  %v1669_v35 = vadd.f32 %v1584_v32, %v1485_v30  ;;  %v1686_v37 = vadd.f32 %v4528_v16, %v1670_v29  ;;  %v1304_v15 = vadd.f32 %v4522_v61, %v1120_v9 }
 0x170   :  { %v1588_v5 = vpop.f32.mrf.mxu0 }
 0x171   :  { %v1671_v27 = vadd.f32 %v1588_v5, %v1487_v34  ;;  %1696 = vrot.lane.b32.xlu1 %v4534_v36, %s3930_s19  ;;  %v4541_v12 = vpop.f32.mrf.mxu1  ;;  %1691 = vst.msk [vmem:[%s4979_s3] sm:$0xff] %vm4980_vm10, %v4534_v36  ;;  %v4564_v50 = vadd.f32 %v4528_v16, %v1669_v35  ;;  %v1488_v25 = vadd.f32 %v4520_v60, %v1304_v15 }
 0x172   :  { %v4548_v39 = vpop.f32.mrf.mxu0 }
 0x173   :  { %v4551_v41 = vadd.f32 %v4524_v11, %v1671_v27  ;;  %1842 = vrot.lane.b32.xlu0 %v1689_v28, %s3939_s21  ;;  %v3866_v42 = vpop.f32.mrf.mxu1 }
 0x174   :  { %v3861_v43 = vpop.f32.mrf.mxu0 }
 0x175   :  { %1706 = vrot.lane.b32.xlu1 %v4534_v36, %s3940_s22  ;;  %v2175_v44 = vadd.f32 %v3866_v42, %v3861_v43  ;;  %v2169_v40 = vpop.f32.mrf.mxu1  ;;  %1693 = vst.msk [vmem:[%s4979_s3 + $0x10] sm:$0xf] %vm4981_vm11, %v4551_v41 }
 0x176   :  { %v2011_v46 = vpop.f32.mrf.mxu0 }
 0x177   :  { %1827 = vrot.lane.b32.xlu0 %v1686_v37, %s3938_s1  ;;  %v2170_v47 = vadd.f32 %v2169_v40, %v2011_v46  ;;  %v2263_v45 = vpop.f32.mrf.mxu1 }
 0x178   :  { %v2092_v48 = vpop.f32.mrf.mxu0 }
 0x179   :  { %1716 = vrot.lane.b32.xlu1 %v4534_v36, %s3941_s25  ;;  %v4568_v52 = vpop.f32.mrf.mxu1  ;;  %v2093_v18 = vadd.f32 %v2092_v48, %v4526_v22 }
 0x17a   :  { %v4570_v49 = vpop.f32.mrf.mxu0 }
 0x17b   :  { %1760 = vrot.lane.b32.xlu0 %v4564_v50, %s3942_s26  ;;  %v2269_v53 = vpop.f32.mrf.mxu1  ;;  %v2349_v28 = vadd.f32 %v2263_v45, %v2093_v18 }
 0x17c   :  { %v2098_v51 = vpop.f32.mrf.mxu0 }
 0x17d   :  { %1726 = vrot.lane.b32.xlu1 %v4534_v36, %s3943_s28  ;;  %v4576_v54 = vpop.f32.mrf.mxu1  ;;  %v2099_v32 = vadd.f32 %v2098_v51, %v4537_v38 }
 0x17e   :  { %v4580_v56 = vpop.f32.mrf.mxu0 }
 0x17f   :  { %1698 = vrot.lane.b32.xlu0 %v4551_v41, %s3930_s19  ;;  %v3876_v57 = vpop.f32.mrf.mxu1  ;;  %v2352_v30 = vadd.f32 %v2269_v53, %v2099_v32 }
 0x180   :  { %v3871_v58 = vpop.f32.mrf.mxu0 }
 0x181   :  { %v2354_v59 = vadd.f32 %v3871_v58, %v2175_v44  ;;  %1736 = vrot.lane.b32.xlu1 %v4534_v36, %s3944_s29  ;;  %v2517_v62 = vpop.f32.mrf.mxu1 }
 0x182   :  { %v2340_v63 = vpop.f32.mrf.mxu0 }
 0x183   :  { %v2351_v2 = vadd.f32 %v2340_v63, %v2170_v47  ;;  %v2531_v1 = vadd.f32 %v3876_v57, %v2354_v59  ;;  %1708 = vrot.lane.b32.xlu0 %v4551_v41, %s3940_s22  ;;  %v2617_v6 = vpop.f32.mrf.mxu1 }
 0x184   :  { %v2440_v3 = vpop.f32.mrf.mxu0 }
 0x185   :  { %v2528_v4 = vadd.f32 %v2517_v62, %v2351_v2  ;;  %1746 = vrot.lane.b32.xlu1 %v4534_v36, %s3945_s27  ;;  %v4592_v7 = vpop.f32.mrf.mxu1  ;;  %v2526_v5 = vadd.f32 %v2440_v3, %v2349_v28 }
 0x186   :  { %v2442_v8 = vpop.f32.mrf.mxu0 }
 0x187   :  { %1718 = vrot.lane.b32.xlu0 %v4551_v41, %s3941_s25  ;;  %v2623_v20 = vpop.f32.mrf.mxu1  ;;  %v2703_v35 = vadd.f32 %v2617_v6, %v2526_v5 }
 0x188   :  { %v2446_v10 = vpop.f32.mrf.mxu0 }
 0x189   :  { %1758 = vrot.lane.b32.xlu1 %v4534_v36, %s3942_s26  ;;  %v4599_v13 = vpop.f32.mrf.mxu1  ;;  %v1672_v36 = vadd.f32 %v4548_v39, %v1488_v25  ;;  %v2529_v44 = vadd.f32 %v2446_v10, %v2352_v30  ;;  %v2101_v25 = vadd.f32 %v4580_v56, %v4541_v12 }
 0x18a   :  { %v4602_v17 = vpop.f32.mrf.mxu0 }
 0x18b   :  { %1728 = vrot.lane.b32.xlu0 %v4551_v41, %s3943_s28  ;;  %v3886_v19 = vpop.f32.mrf.mxu1  ;;  %v1688_v43 = vadd.f32 %v4524_v11, %v1672_v36  ;;  %v2706_v48 = vadd.f32 %v2623_v20, %v2529_v44 }
 0x18c   :  { %v3881_v23 = vpop.f32.mrf.mxu0 }
 0x18d   :  { %v2708_v24 = vadd.f32 %v3881_v23, %v2531_v1  ;;  %1840 = vrot.lane.b32.xlu1 %v1686_v37, %s3939_s21  ;;  %v2871_v14 = vpop.f32.mrf.mxu1  ;;  %v2095_v37 = vadd.f32 %v4570_v49, %v4531_v31 }
 0x18e   :  { %v2694_v26 = vpop.f32.mrf.mxu0 }
 0x18f   :  { %v2705_v61 = vadd.f32 %v2694_v26, %v2528_v4  ;;  %v2885_v33 = vadd.f32 %v3886_v19, %v2708_v24  ;;  %1738 = vrot.lane.b32.xlu0 %v4551_v41, %s3944_s29  ;;  %v2971_v22 = vpop.f32.mrf.mxu1  ;;  %v2350_v55 = vadd.f32 %v4568_v52, %v2095_v37 }
 0x190   :  { %v2794_v34 = vpop.f32.mrf.mxu0 }
 0x191   :  { %v2882_v29 = vadd.f32 %v2871_v14, %v2705_v61  ;;  %1775 = vrot.lane.b32.xlu1 %v4564_v50, %s3946_s4  ;;  %v2973_v60 = vpop.f32.mrf.mxu1  ;;  %v2880_v46 = vadd.f32 %v2794_v34, %v2703_v35  ;;  %v2527_v63 = vadd.f32 %v2442_v8, %v2350_v55 }
 0x192   :  { %v2796_v27 = vpop.f32.mrf.mxu0 }
 0x193   :  { %1748 = vrot.lane.b32.xlu0 %v4551_v41, %s3945_s27  ;;  %v2977_v38 = vpop.f32.mrf.mxu1  ;;  %v3057_v58 = vadd.f32 %v2971_v22, %v2880_v46  ;;  %v2704_v9 = vadd.f32 %v4592_v7, %v2527_v63 }
 0x194   :  { %v2800_v42 = vpop.f32.mrf.mxu0 }
 0x195   :  { %1783 = vrot.lane.b32.xlu1 %v4564_v50, %s3931_s24  ;;  %v4620_v39 = vpop.f32.mrf.mxu1  ;;  %v2883_v59 = vadd.f32 %v2800_v42, %v2706_v48  ;;  %v2881_v15 = vadd.f32 %v2796_v27, %v2704_v9 }
 0x196   :  { %v4624_v40 = vpop.f32.mrf.mxu0 }
 0x197   :  { %1764 = vrot.lane.b32.xlu0 %v1688_v43, %s3942_s26  ;;  %v3896_v47 = vpop.f32.mrf.mxu1  ;;  %v3060_v21 = vadd.f32 %v2977_v38, %v2883_v59  ;;  %v3058_v7 = vadd.f32 %v2973_v60, %v2881_v15 }
 0x198   :  { %v3891_v45 = vpop.f32.mrf.mxu0 }
 0x199   :  { %v3062_v53 = vadd.f32 %v3891_v45, %v2885_v33  ;;  %1791 = vrot.lane.b32.xlu1 %v4564_v50, %s3933_s30  ;;  %v3225_v51 = vpop.f32.mrf.mxu1 }
 0x19a   :  { %v3048_v57 = vpop.f32.mrf.mxu0 }
 0x19b   :  { %v3059_v62 = vadd.f32 %v3048_v57, %v2882_v29  ;;  %v4630_v31 = vadd.f32 %v3896_v47, %v3062_v53  ;;  %1777 = vrot.lane.b32.xlu0 %v1688_v43, %s3946_s4  ;;  %v3325_v49 = vpop.f32.mrf.mxu1 }
 0x19c   :  { %v3148_v0 = vpop.f32.mrf.mxu0 }
 0x19d   :  { %v3234_v2 = vadd.f32 %v3148_v0, %v3057_v58  ;;  %v4633_v1 = vadd.f32 %v3225_v51, %v3059_v62  ;;  %1799 = vrot.lane.b32.xlu1 %v4564_v50, %s3947_s5  ;;  %v3327_v6 = vpop.f32.mrf.mxu1 }
 0x19e   :  { %v3150_v52 = vpop.f32.mrf.mxu0 }
 0x19f   :  { %v3411_v3 = vadd.f32 %v3325_v49, %v3234_v2  ;;  %1785 = vrot.lane.b32.xlu0 %v1688_v43, %s3931_s24  ;;  %v3331_v20 = vpop.f32.mrf.mxu1  ;;  %v3235_v23 = vadd.f32 %v3150_v52, %v3058_v7 }
 0x1a0   :  { %v3154_v4 = vpop.f32.mrf.mxu0 }
 0x1a1   :  { %v3417_v10 = vadd.f32 %v3411_v3, %v4528_v16  ;;  %v3237_v8 = vadd.f32 %v3154_v4, %v3060_v21  ;;  %1807 = vrot.lane.b32.xlu1 %v4564_v50, %s3948_s7  ;;  %v3412_v24 = vadd.f32 %v3327_v6, %v3235_v23  ;;  %v3333_v28 = vpop.f32.mrf.mxu1 }
 0x1a3   :  { %v3414_v18 = vadd.f32 %v3331_v20, %v3237_v8  ;;  %1793 = vrot.lane.b32.xlu0 %v1688_v43, %s3933_s30  ;;  %3726 = vst.msk [vmem:[%s4979_s3 + $0x20] sm:$0xff] %vm4980_vm10, %v3417_v10  ;;  %v3418_v14 = vadd.f32 %v3412_v24, %v4528_v16 }
 0x1a5   :  { %v4648_v19 = vadd.f32 %v3414_v18, %v4524_v11  ;;  %1815 = vrot.lane.b32.xlu1 %v4564_v50, %s3949_s9 }
 0x1a7   :  { %1801 = vrot.lane.b32.xlu0 %v1688_v43, %s3947_s5  ;;  %3727 = vst.msk [vmem:[%s4979_s3 + $0x30] sm:$0xf] %vm4981_vm11, %v4648_v19 }
 0x1a9   :  { %1825 = vrot.lane.b32.xlu1 %v4564_v50, %s3938_s1  ;;  %v2353_v50 = vadd.f32 %v4576_v54, %v2101_v25  ;;  %v3156_v54 = vpop.f32.mrf.mxu0 }
 0x1ab   :  { %1809 = vrot.lane.b32.xlu0 %v1688_v43, %s3948_s7  ;;  %v3901_v61 = vpop.f32.mrf.mxu0 }
 0x1ac   :  { %v3416_v33 = vadd.f32 %v3901_v61, %v4630_v31 }
 0x1ad   :  { %1762 = vrot.lane.b32.xlu1 %v4551_v41, %s3942_s26  ;;  %v2530_v41 = vadd.f32 %v4602_v17, %v2353_v50  ;;  %v3402_v29 = vpop.f32.mrf.mxu0 }
 0x1ae   :  { %v3422_v36 = vadd.f32 %v3416_v33, %v4524_v11  ;;  %v3413_v27 = vadd.f32 %v3402_v29, %v4633_v1 }
 0x1af   :  { %1817 = vrot.lane.b32.xlu0 %v1688_v43, %s3949_s9  ;;  %v2707_v26 = vadd.f32 %v4599_v13, %v2530_v41 }
 0x1b0   :  { %v3419_v38 = vadd.f32 %v3413_v27, %v4528_v16 }
 0x1b1   :  { %1829 = vrot.lane.b32.xlu1 %v1688_v43, %s3938_s1  ;;  %v2884_v12 = vadd.f32 %v4624_v40, %v2707_v26 }
 0x1b3   :  { %3480 = vrot.lane.b32.xlu0 %v3418_v14, %s3942_s26  ;;  %v3061_v56 = vadd.f32 %v4620_v39, %v2884_v12 }
 0x1b5   :  { %3428 = vrot.lane.b32.xlu1 %v3417_v10, %s3930_s19  ;;  %v3238_v17 = vadd.f32 %v3156_v54, %v3061_v56 }
 0x1b7   :  { %3430 = vrot.lane.b32.xlu0 %v4648_v19, %s3930_s19  ;;  %v3415_v13 = vadd.f32 %v3333_v28, %v3238_v17 }
 0x1b9   :  { %3436 = vrot.lane.b32.xlu1 %v3417_v10, %s3940_s22  ;;  %v3421_v32 = vadd.f32 %v3415_v13, %v4524_v11 }
 0x1bb   :  { %3438 = vrot.lane.b32.xlu0 %v4648_v19, %s3940_s22 }
 0x1bd   :  { %3444 = vrot.lane.b32.xlu1 %v3417_v10, %s3941_s25 }
 0x1bf   :  { %3446 = vrot.lane.b32.xlu0 %v4648_v19, %s3941_s25 }
 0x1c1   :  { %3452 = vrot.lane.b32.xlu1 %v3417_v10, %s3943_s28 }
 0x1c3   :  { %3454 = vrot.lane.b32.xlu0 %v4648_v19, %s3943_s28 }
 0x1c5   :  { %3460 = vrot.lane.b32.xlu1 %v3417_v10, %s3944_s29 }
 0x1c7   :  { %3462 = vrot.lane.b32.xlu0 %v4648_v19, %s3944_s29 }
 0x1c9   :  { %3468 = vrot.lane.b32.xlu1 %v3417_v10, %s3945_s27 }
 0x1cb   :  { %3470 = vrot.lane.b32.xlu0 %v4648_v19, %s3945_s27 }
 0x1cd   :  { %3478 = vrot.lane.b32.xlu1 %v3417_v10, %s3942_s26 }
 0x1cf   :  { %3494 = vrot.lane.b32.xlu0 %v3421_v32, %s3946_s4 }
 0x1d1   :  { %3492 = vrot.lane.b32.xlu1 %v3418_v14, %s3946_s4 }
 0x1d3   :  { %3502 = vrot.lane.b32.xlu0 %v3421_v32, %s3931_s24 }
 0x1d5   :  { %3500 = vrot.lane.b32.xlu1 %v3418_v14, %s3931_s24 }
 0x1d7   :  { %3510 = vrot.lane.b32.xlu0 %v3421_v32, %s3933_s30 }
 0x1d9   :  { %3508 = vrot.lane.b32.xlu1 %v3418_v14, %s3933_s30 }
 0x1db   :  { %3518 = vrot.lane.b32.xlu0 %v3421_v32, %s3947_s5 }
 0x1dd   :  { %3516 = vrot.lane.b32.xlu1 %v3418_v14, %s3947_s5 }
 0x1df   :  { %3526 = vrot.lane.b32.xlu0 %v3421_v32, %s3948_s7 }
 0x1e1   :  { %v4704_v22 = vpop.permute.xlu0 %1831  ;;  %3524 = vrot.lane.b32.xlu1 %v3418_v14, %s3948_s7 }
 0x1e3   :  { %3534 = vrot.lane.b32.xlu0 %v3421_v32, %s3949_s9  ;;  %v1697_v34 = vpop.permute.xlu1 %1696 }
 0x1e4   :  { %1703 = vst.msk [vmem:[%s4979_s3] sm:$0xff] %vm1702_vm12, %v1697_v34 }
 0x1e5   :  { %v4713_v5 = vpop.permute.xlu0 %1842  ;;  %3532 = vrot.lane.b32.xlu1 %v3418_v14, %s3949_s9 }
 0x1e7   :  { %3548 = vrot.lane.b32.xlu0 %v3422_v36, %s3938_s1  ;;  %v1707_v60 = vpop.permute.xlu1 %1706 }
 0x1e8   :  { %1713 = vst.msk [vmem:[%s4979_s3] sm:$0xff] %vm1712_vm13, %v1707_v60 }
 0x1e9   :  { %v4722_v30 = vpop.permute.xlu0 %1827  ;;  %3542 = vrot.lane.b32.xlu1 %v3418_v14, %s3938_s1 }
 0x1eb   :  { %3484 = vrot.lane.b32.xlu0 %v3421_v32, %s3942_s26  ;;  %v1717_v11 = vpop.permute.xlu1 %1716 }
 0x1ec   :  { %1723 = vst.msk [vmem:[%s4979_s3] sm:$0xff] %vm1722_vm14, %v1717_v11 }
 0x1ed   :  { %v1761_v42 = vpop.permute.xlu0 %1760  ;;  %3482 = vrot.lane.b32.xlu1 %v4648_v19, %s3942_s26 }
 0x1ef   :  { %3544 = vrot.lane.b32.xlu0 %v3419_v38, %s3938_s1  ;;  %v1727_v43 = vpop.permute.xlu1 %1726 }
 0x1f0   :  { %1733 = vst.msk [vmem:[%s4979_s3] sm:$0xff] %vm1732_vm15, %v1727_v43 }
 0x1f1   :  { %v1699_v35 = vpop.permute.xlu0 %1698  ;;  %3546 = vrot.lane.b32.xlu1 %v3421_v32, %s3938_s1 }
 0x1f2   :  { %1705 = vst.msk [vmem:[%s4979_s3 + $0x10] sm:$0xf] %vm1704_vm0, %v1699_v35 }
 0x1f3   :  { %3558 = vrot.lane.b32.xlu0 %v3422_v36, %s3939_s21  ;;  %v1737_v16 = vpop.permute.xlu1 %1736 }
 0x1f4   :  { %1743 = vst.msk [vmem:[%s4979_s3] sm:$0xff] %vm1742_vm1, %v1737_v16 }
 0x1f5   :  { %v1709_v44 = vpop.permute.xlu0 %1708  ;;  %3556 = vrot.lane.b32.xlu1 %v3419_v38, %s3939_s21 }
 0x1f6   :  { %1715 = vst.msk [vmem:[%s4979_s3 + $0x10] sm:$0xf] %vm1714_vm2, %v1709_v44 }
 0x1f7   :  { %v1747_v39 = vpop.permute.xlu1 %1746 }
 0x1f8   :  { %1753 = vst.msk [vmem:[%s4979_s3] sm:$0xff] %vm4983_vm3, %v1747_v39 }
 0x1f9   :  { %v1719_v37 = vpop.permute.xlu0 %1718 }
 0x1fa   :  { %1725 = vst.msk [vmem:[%s4979_s3 + $0x10] sm:$0xf] %vm1724_vm4, %v1719_v37 }
 0x1fb   :  { %v1759_v40 = vpop.permute.xlu1 %1758 }
 0x1fc   :  { %v1767_v46 = vsel %vm1766_vm5, %v1759_v40, %v1761_v42 }
 0x1fd   :  { %1772 = vst.msk [vmem:[%s4979_s3] sm:$0xff] %vm1771_vm6, %v1767_v46  ;;  %v1729_v47 = vpop.permute.xlu0 %1728 }
 0x1fe   :  { %1735 = vst.msk [vmem:[%s4979_s3 + $0x10] sm:$0xf] %vm1734_vm7, %v1729_v47 }
 0x1ff   :  { %v1841_v45 = vpop.permute.xlu1 %1840 }
 0x201   :  { %v1739_v48 = vpop.permute.xlu0 %1738 }
 0x202   :  { %1745 = vst.msk [vmem:[%s4979_s3 + $0x10] sm:$0xf] %vm1744_vm8, %v1739_v48 }
 0x203   :  { %v1776_v53 = vpop.permute.xlu1 %1775 }
 0x204   :  { %1781 = vst.msk [vmem:[%s4979_s3 + $0x8] sm:$0xff] %vm4980_vm10, %v1776_v53  ;;  %vm4982_vm10 = vcmask 818176  }
 0x205   :  { %v1749_v51 = vpop.permute.xlu0 %1748 }
 0x206   :  { %1755 = vst.msk [vmem:[%s4979_s3 + $0x10] sm:$0xf] %vm1754_vm9, %v1749_v51 }
 0x207   :  { %v1784_v55 = vpop.permute.xlu1 %1783 }
 0x208   :  { %1789 = vst.msk [vmem:[%s4979_s3 + $0x8] sm:$0xff] %vm1702_vm12, %v1784_v55 }
 0x209   :  { %v1765_v57 = vpop.permute.xlu0 %1764 }
 0x20b   :  { %v1792_v58 = vpop.permute.xlu1 %1791 }
 0x20c   :  { %1797 = vst.msk [vmem:[%s4979_s3 + $0x8] sm:$0xff] %vm1712_vm13, %v1792_v58 }
 0x20d   :  { %v1778_v59 = vpop.permute.xlu0 %1777 }
 0x20e   :  { %1782 = vst.msk [vmem:[%s4979_s3 + $0x18] sm:$0xf] %vm4981_vm11, %v1778_v59  ;;  %vm1773_vm11 = vcmask 1044352  }
 0x20f   :  { %v1800_v62 = vpop.permute.xlu1 %1799 }
 0x210   :  { %1805 = vst.msk [vmem:[%s4979_s3 + $0x8] sm:$0xff] %vm1722_vm14, %v1800_v62 }
 0x211   :  { %v1786_v31 = vpop.permute.xlu0 %1785 }
 0x212   :  { %1790 = vst.msk [vmem:[%s4979_s3 + $0x18] sm:$0xf] %vm1704_vm0, %v1786_v31 }
 0x213   :  { %v1808_v49 = vpop.permute.xlu1 %1807 }
 0x214   :  { %1813 = vst.msk [vmem:[%s4979_s3 + $0x8] sm:$0xff] %vm1732_vm15, %v1808_v49 }
 0x215   :  { %v1794_v0 = vpop.permute.xlu0 %1793 }
 0x216   :  { %1798 = vst.msk [vmem:[%s4979_s3 + $0x18] sm:$0xf] %vm1714_vm2, %v1794_v0 }
 0x217   :  { %v1816_v63 = vpop.permute.xlu1 %1815 }
 0x218   :  { %1821 = vst.msk [vmem:[%s4979_s3 + $0x8] sm:$0xff] %vm1742_vm1, %v1816_v63 }
 0x219   :  { %v1802_v2 = vpop.permute.xlu0 %1801 }
 0x21a   :  { %1806 = vst.msk [vmem:[%s4979_s3 + $0x18] sm:$0xf] %vm1724_vm4, %v1802_v2 }
 0x21b   :  { %v1826_v1 = vpop.permute.xlu1 %1825 }
 0x21c   :  { %v1834_v6 = vsel %vm4982_vm10, %v1826_v1, %v4722_v30 }
 0x21d   :  { %1838 = vst.msk [vmem:[%s4979_s3 + $0x8] sm:$0xff] %vm4983_vm3, %v1834_v6  ;;  %v1810_v52 = vpop.permute.xlu0 %1809 }
 0x21e   :  { %1846 = vst.msk [vmem:[%s4979_s3 + $0x8] sm:$0xff] %vm1771_vm6, %v1841_v45 }
 0x21f   :  { %1814 = vst.msk [vmem:[%s4979_s3 + $0x18] sm:$0xf] %vm1734_vm7, %v1810_v52  ;;  %v1763_v21 = vpop.permute.xlu1 %1762 }
 0x220   :  { %v1768_v3 = vsel %vm1766_vm5, %v1763_v21, %v1765_v57 }
 0x221   :  { %1774 = vst.msk [vmem:[%s4979_s3 + $0x10] sm:$0xf] %vm1773_vm11, %v1768_v3  ;;  %v1818_v4 = vpop.permute.xlu0 %1817 }
 0x222   :  { %1822 = vst.msk [vmem:[%s4979_s3 + $0x18] sm:$0xf] %vm1744_vm8, %v1818_v4 }
 0x223   :  { %v1830_v20 = vpop.permute.xlu1 %1829 }
 0x224   :  { %v1835_v9 = vsel %vm4982_vm10, %v1830_v20, %v4704_v22  ;;  %vm4984_vm10 = vcmask 125952  }
 0x225   :  { %1839 = vst.msk [vmem:[%s4979_s3 + $0x18] sm:$0xf] %vm1754_vm9, %v1835_v9  ;;  %v3481_v10 = vpop.permute.xlu0 %3480 }
 0x226   :  { %1847 = vst.msk [vmem:[%s4979_s3 + $0x18] sm:$0xf] %vm1773_vm11, %v4713_v5 }
 0x227   :  { %v3429_v8 = vpop.permute.xlu1 %3428 }
 0x228   :  { %3728 = vst.msk [vmem:[%s4979_s3 + $0x20] sm:$0xff] %vm1702_vm12, %v3429_v8 }
 0x229   :  { %v3431_v15 = vpop.permute.xlu0 %3430 }
 0x22a   :  { %3729 = vst.msk [vmem:[%s4979_s3 + $0x30] sm:$0xf] %vm1704_vm0, %v3431_v15 }
 0x22b   :  { %v3437_v18 = vpop.permute.xlu1 %3436 }
 0x22c   :  { %3730 = vst.msk [vmem:[%s4979_s3 + $0x20] sm:$0xff] %vm1712_vm13, %v3437_v18 }
 0x22d   :  { %v3439_v19 = vpop.permute.xlu0 %3438 }
 0x22e   :  { %3731 = vst.msk [vmem:[%s4979_s3 + $0x30] sm:$0xf] %vm1714_vm2, %v3439_v19 }
 0x22f   :  { %v3445_v7 = vpop.permute.xlu1 %3444 }
 0x230   :  { %3732 = vst.msk [vmem:[%s4979_s3 + $0x20] sm:$0xff] %vm1722_vm14, %v3445_v7 }
 0x231   :  { %v3447_v23 = vpop.permute.xlu0 %3446 }
 0x232   :  { %3733 = vst.msk [vmem:[%s4979_s3 + $0x30] sm:$0xf] %vm1724_vm4, %v3447_v23 }
 0x233   :  { %v3453_v24 = vpop.permute.xlu1 %3452 }
 0x234   :  { %3734 = vst.msk [vmem:[%s4979_s3 + $0x20] sm:$0xff] %vm1732_vm15, %v3453_v24 }
 0x235   :  { %v3455_v14 = vpop.permute.xlu0 %3454 }
 0x236   :  { %3735 = vst.msk [vmem:[%s4979_s3 + $0x30] sm:$0xf] %vm1734_vm7, %v3455_v14 }
 0x237   :  { %v3461_v25 = vpop.permute.xlu1 %3460 }
 0x238   :  { %3736 = vst.msk [vmem:[%s4979_s3 + $0x20] sm:$0xff] %vm1742_vm1, %v3461_v25 }
 0x239   :  { %v3463_v50 = vpop.permute.xlu0 %3462 }
 0x23a   :  { %3737 = vst.msk [vmem:[%s4979_s3 + $0x30] sm:$0xf] %vm1744_vm8, %v3463_v50 }
 0x23b   :  { %v3469_v41 = vpop.permute.xlu1 %3468 }
 0x23c   :  { %3738 = vst.msk [vmem:[%s4979_s3 + $0x20] sm:$0xff] %vm4983_vm3, %v3469_v41  ;;  %vm4985_vm3 = vcmask 130048  }
 0x23d   :  { %v3471_v26 = vpop.permute.xlu0 %3470 }
 0x23e   :  { %3739 = vst.msk [vmem:[%s4979_s3 + $0x30] sm:$0xf] %vm1754_vm9, %v3471_v26 }
 0x23f   :  { %v3479_v12 = vpop.permute.xlu1 %3478 }
 0x240   :  { %v3486_v54 = vsel %vm1766_vm5, %v3479_v12, %v3481_v10 }
 0x241   :  { %3740 = vst.msk [vmem:[%s4979_s3 + $0x20] sm:$0xff] %vm1771_vm6, %v3486_v54  ;;  %v3495_v56 = vpop.permute.xlu0 %3494 }
 0x242   :  { %3743 = vst.msk [vmem:[%s4979_s3 + $0x38] sm:$0xf] %vm4984_vm10, %v3495_v56  ;;  %vm4986_vm10 = vcmask 818176  }
 0x243   :  { %v3493_v17 = vpop.permute.xlu1 %3492 }
 0x244   :  { %3742 = vst.msk [vmem:[%s4979_s3 + $0x28] sm:$0xff] %vm4985_vm3, %v3493_v17 }
 0x245   :  { %v3503_v28 = vpop.permute.xlu0 %3502 }
 0x246   :  { %3745 = vst.msk [vmem:[%s4979_s3 + $0x38] sm:$0xf] %vm1704_vm0, %v3503_v28 }
 0x247   :  { %v3501_v13 = vpop.permute.xlu1 %3500 }
 0x248   :  { %3744 = vst.msk [vmem:[%s4979_s3 + $0x28] sm:$0xff] %vm1702_vm12, %v3501_v13  ;;  %vm4987_vm12 = vcmask 917248  }
 0x249   :  { %v3511_v32 = vpop.permute.xlu0 %3510 }
 0x24a   :  { %3747 = vst.msk [vmem:[%s4979_s3 + $0x38] sm:$0xf] %vm1714_vm2, %v3511_v32 }
 0x24b   :  { %v3509_v61 = vpop.permute.xlu1 %3508 }
 0x24c   :  { %3746 = vst.msk [vmem:[%s4979_s3 + $0x28] sm:$0xff] %vm1712_vm13, %v3509_v61  ;;  %vm4988_vm13 = vmmov %vm4986_vm10 }
 0x24d   :  { %v3519_v33 = vpop.permute.xlu0 %3518 }
 0x24e   :  { %3749 = vst.msk [vmem:[%s4979_s3 + $0x38] sm:$0xf] %vm1724_vm4, %v3519_v33 }
 0x24f   :  { %v3517_v22 = vpop.permute.xlu1 %3516 }
 0x250   :  { %3748 = vst.msk [vmem:[%s4979_s3 + $0x28] sm:$0xff] %vm1722_vm14, %v3517_v22 }
 0x251   :  { %v3527_v34 = vpop.permute.xlu0 %3526 }
 0x252   :  { %3751 = vst.msk [vmem:[%s4979_s3 + $0x38] sm:$0xf] %vm1734_vm7, %v3527_v34 }
 0x253   :  { %v3525_v36 = vpop.permute.xlu1 %3524 }
 0x254   :  { %3750 = vst.msk [vmem:[%s4979_s3 + $0x28] sm:$0xff] %vm1732_vm15, %v3525_v36 }
 0x255   :  { %v3535_v5 = vpop.permute.xlu0 %3534 }
 0x256   :  { %3753 = vst.msk [vmem:[%s4979_s3 + $0x38] sm:$0xf] %vm1744_vm8, %v3535_v5 }
 0x257   :  { %v3533_v29 = vpop.permute.xlu1 %3532 }
 0x258   :  { %3752 = vst.msk [vmem:[%s4979_s3 + $0x28] sm:$0xff] %vm1742_vm1, %v3533_v29 }
 0x259   :  { %v3549_v60 = vpop.permute.xlu0 %3548 }
 0x25b   :  { %v3543_v27 = vpop.permute.xlu1 %3542 }
 0x25d   :  { %v3485_v30 = vpop.permute.xlu0 %3484 }
 0x25f   :  { %v3483_v11 = vpop.permute.xlu1 %3482 }
 0x260   :  { %v3487_v38 = vsel %vm1766_vm5, %v3483_v11, %v3485_v30 }
 0x261   :  { %3741 = vst.msk [vmem:[%s4979_s3 + $0x30] sm:$0xf] %vm1773_vm11, %v3487_v38  ;;  %v3545_v42 = vpop.permute.xlu0 %3544 }
 0x262   :  { %v3550_v43 = vsel %vm4986_vm10, %v3543_v27, %v3545_v42 }
 0x263   :  { %3754 = vst.msk [vmem:[%s4979_s3 + $0x28] sm:$0xff] %vm4987_vm12, %v3550_v43  ;;  %v3547_v35 = vpop.permute.xlu1 %3546 }
 0x264   :  { %v3551_v16 = vsel %vm4988_vm13, %v3547_v35, %v3549_v60 }
 0x265   :  { %3755 = vst.msk [vmem:[%s4979_s3 + $0x38] sm:$0xf] %vm1754_vm9, %v3551_v16  ;;  %v3559_v44 = vpop.permute.xlu0 %3558 }
 0x266   :  { %3757 = vst.msk [vmem:[%s4979_s3 + $0x38] sm:$0xf] %vm1773_vm11, %v3559_v44 }
 0x267   :  { %v3557_v39 = vpop.permute.xlu1 %3556 }
 0x268   :  { %3756 = vst.msk [vmem:[%s4979_s3 + $0x28] sm:$0xff] %vm1771_vm6, %v3557_v39 }

</bundles_post_ra>
